<compile_context>
chip_gen: v5e
topology: v5e:2x2
jax: 0.10.0
libtpu: 0.0.40
codegen_flags: <defaults>
</compile_context>

<pallas_src>
import functools

import numpy as np
import jax
import jax.numpy as jnp
from jax.experimental import pallas as pl
from jax.experimental.pallas import tpu as pltpu


# ------------------------------ fused kernel ------------------------------ #

def resblock_kernel(x_ref, in_w_ref, in_b_ref, blk_w_ref, blk_b_ref,
                    gamma_ref, beta_ref, out_w_ref, out_b_ref, gfold_ref,
                    o_ref, pad_ref, act_ref, *,
                    N, H, W, Cout, repeat, stride, Ho, Wo):
    """in_project + repeat*(conv+BN+ReLU+residual) + out_project, fully fused.

    Layouts (lane-dense, channel-minor lanes):
      activations : (N*H,     W*Cout)  fp32  (act_ref — residual / BN math)
      padded acts : (N*(H+2), W*Cout)  bf16  (pad_ref — MXU operand; per-image top /
                     bottom halo ROWS stay zero; width padding is folded into the
                     banded weights so there are no halo columns)
      conv weights: (3, W*Cout, Wo*Cout) bf16, banded (kw taps + stride folded in)
    """
    Hp = H + 2
    WC = W * Cout

    # Zero once: the per-image halo rows stay zero for every conv.
    pad_ref[...] = jnp.zeros_like(pad_ref)

    def write_pad(a):                                    # a: (N*H, WC) fp32
        a_bf = a.astype(jnp.bfloat16)
        for n in range(N):                               # unmasked full-lane stores
            pad_ref[pl.ds(n * Hp + 1, H), :] = a_bf[n * H:(n + 1) * H, :]

    def conv(get_w, bias, ho, s):
        """3x3 conv as 3 banded bf16 MXU matmuls (one per kh tap) per image."""
        acc = [None] * N
        for kh in range(3):
            w_kh = get_w(kh)                             # (WC, ow) bf16
            for n in range(N):
                r0 = n * Hp + kh
                if s == 1:
                    slab = pad_ref[pl.ds(r0, ho), :]     # (ho, WC) bf16
                else:                                    # strided row read, no ::s gather
                    slab = pad_ref[pl.ds(r0, ho, stride=s), :]
                part = jnp.dot(slab, w_kh, preferred_element_type=jnp.float32)
                acc[n] = part if acc[n] is None else acc[n] + part
        y = acc[0] if N == 1 else jnp.concatenate(acc, axis=0)
        return y + bias                                  # (N*ho, ow) fp32

    # ---- in_project: conv3x3(Cin -> Cout), stride 1 ----
    write_pad(x_ref[...])
    act_ref[...] = conv(lambda kh: in_w_ref[kh], in_b_ref[...], H, 1)

    # ---- repeated blocks: x = relu(BN(conv(x))) + x  (batch statistics) ----
    ones_row = jnp.ones((1, N * H), jnp.float32)         # hoisted out of the loop
    gfold = gfold_ref[...]                                # (WC, WC) per-channel fold
    eps = jnp.float32(1e-5)

    for i in range(repeat):                               # statically unrolled (small)
        a = act_ref[...]                                   # (N*H, WC) fp32
        write_pad(a)
        y = conv(lambda kh, i=i: blk_w_ref[i, kh], blk_b_ref[i], H, 1)
        # Two-pass BN batch stats; reductions on the MXU (ones-row matmul + fold).
        # Results arrive already broadcast per channel across the W lane groups.
        mean_t = jnp.dot(jnp.dot(ones_row, y, preferred_element_type=jnp.float32),
                         gfold, preferred_element_type=jnp.float32)
        d = y - mean_t
        var_t = jnp.dot(jnp.dot(ones_row, d * d, preferred_element_type=jnp.float32),
                        gfold, preferred_element_type=jnp.float32)
        yn = d * jax.lax.rsqrt(var_t + eps) * gamma_ref[i] + beta_ref[i]
        act_ref[...] = jnp.maximum(yn, 0.0) + a            # ReLU + residual (fp32)

    # ---- out_project: conv3x3(Cout -> Cout), stride=stride ----
    write_pad(act_ref[...])
    y = conv(lambda kh: out_w_ref[kh], out_b_ref[...], Ho, stride)
    o_ref[...] = y.astype(o_ref.dtype)                     # (N*Ho, Wo*Cout) lane-dense store


# -------------------------------- wrapper ---------------------------------- #

def _banded_weight(w_hwio, w_in, w_out, stride):
    """Fold the 3 kw taps, the width zero-padding and the width stride of a 3x3 conv
    into one banded matrix per kh tap: (3, w_in*Ci, w_out*Co), channel-minor lanes."""
    w = np.asarray(w_hwio, np.float32)                     # (3, 3, Ci, Co)
    _, _, ci, co = w.shape
    wb = np.zeros((3, w_in * ci, w_out * co), np.float32)
    for kh in range(3):
        for kw in range(3):
            for ow in range(w_out):
                iw = ow * stride + kw - 1                  # padding = 1
                if 0 <= iw < w_in:
                    wb[kh, iw * ci:(iw + 1) * ci, ow * co:(ow + 1) * co] = w[kh, kw]
    return jnp.asarray(wb, jnp.bfloat16)


def _tile_lanes(v, width):
    """(1, C) per-channel vector -> (1, width*C), channel-minor (matches activation lanes)."""
    return jnp.tile(jnp.asarray(v, jnp.float32).reshape(1, -1), (1, width))


def _full_spec(shape):
    nd = len(shape)
    return pl.BlockSpec(shape, lambda i, _nd=nd: (0,) * _nd)


def resblock_forward(x_nchw, params, repeat=3, stride=1):
    N, Cin, H, W = x_nchw.shape
    Cout = params["in_w"].shape[-1]
    assert Cin <= Cout, "demo layout packs input channels into Cout-wide lane slots"
    Ho = (H + 2 - 3) // stride + 1
    Wo = (W + 2 - 3) // stride + 1
    WC = W * Cout

    # NCHW -> NHWC -> zero-pad channels to Cout slots -> lane-dense (N*H, W*Cout)
    x = jnp.transpose(x_nchw, (0, 2, 3, 1))
    if Cin < Cout:
        x = jnp.pad(x, ((0, 0), (0, 0), (0, 0), (0, Cout - Cin)))
    x2d = x.reshape(N * H, WC).astype(jnp.float32)

    # Banded bf16 conv weights (in_project input channels zero-padded to Cout slots).
    in_w_full = np.zeros((3, 3, Cout, Cout), np.float32)
    in_w_full[:, :, :Cin, :] = np.asarray(params["in_w"], np.float32)
    in_wb = _banded_weight(in_w_full, W, W, 1)
    blk_wb = jnp.stack([_banded_weight(w, W, W, 1) for w in params["blk_w"]])
    out_wb = _banded_weight(params["out_w"], W, Wo, stride)

    # Per-channel vectors tiled across the W lane groups (fp32).
    in_b_t = _tile_lanes(params["in_b"], W)
    out_b_t = _tile_lanes(params["out_b"], Wo)
    blk_b_t = jnp.stack([_tile_lanes(b, W) for b in params["blk_b"]])
    gamma_t = jnp.stack([_tile_lanes(g, W) for g in params["gamma"]])
    beta_t = jnp.stack([_tile_lanes(b, W) for b in params["beta"]])

    # Fold matrix: (ones_row @ y) @ gfold == per-channel mean, already tiled across W.
    jj = np.arange(WC)
    gfold = jnp.asarray(
        (jj[:, None] % Cout == jj[None, :] % Cout).astype(np.float32) / (N * H * W))

    kernel = functools.partial(
        resblock_kernel, N=N, H=H, W=W, Cout=Cout,
        repeat=repeat, stride=stride, Ho=Ho, Wo=Wo)

    ins = (x2d, in_wb, in_b_t, blk_wb, blk_b_t, gamma_t, beta_t,
           out_wb, out_b_t, gfold)

    out2d = pl.pallas_call(
        kernel,
        out_shape=jax.ShapeDtypeStruct((N * Ho, Wo * Cout), jnp.float32),
        grid=(1,),
        in_specs=[_full_spec(a.shape) for a in ins],
        out_specs=_full_spec((N * Ho, Wo * Cout)),
        scratch_shapes=[
            pltpu.VMEM((N * (H + 2), WC), jnp.bfloat16),   # row-padded bf16 activations
            pltpu.VMEM((N * H, WC), jnp.float32),          # persistent fp32 activation
        ],
        compiler_params=pltpu.CompilerParams(
            dimension_semantics=("arbitrary",)),
    )(*ins)

    out = out2d.reshape(N, Ho, Wo, Cout)
    return jnp.transpose(out, (0, 3, 1, 2))                # NHWC -> NCHW


# ------------------------------ pure-JAX ref ------------------------------- #

def _ref_conv(x, w, b, stride):
    y = jax.lax.conv_general_dilated(
        x, w, window_strides=(stride, stride), padding=[(1, 1), (1, 1)],
        dimension_numbers=("NHWC", "HWIO", "NHWC"))
    return y + b.reshape(1, 1, 1, -1)


def resblock_ref(x_nchw, params, repeat=3, stride=1):
    x = jnp.transpose(x_nchw, (0, 2, 3, 1))
    x = _ref_conv(x, params["in_w"], params["in_b"], 1)
    for i in range(repeat):
        y = _ref_conv(x, params["blk_w"][i], params["blk_b"][i], 1)
        mean = jnp.mean(y, axis=(0, 1, 2), keepdims=True)
        var = jnp.mean((y - mean) ** 2, axis=(0, 1, 2), keepdims=True)
        yn = (y - mean) * jax.lax.rsqrt(var + 1e-5)
        yn = yn * params["gamma"][i].reshape(1, 1, 1, -1) + params["beta"][i].reshape(1, 1, 1, -1)
        x = jnp.maximum(yn, 0.0) + x
    x = _ref_conv(x, params["out_w"], params["out_b"], stride)
    return jnp.transpose(x, (0, 3, 1, 2))


# ---------------------------------- main ------------------------------------ #

if __name__ == "__main__":
    N, Cin, Cout, H, W = 2, 4, 8, 16, 16
    repeat, stride = 3, 1

    key = jax.random.PRNGKey(0)
    keys = jax.random.split(key, 5 + 4 * repeat)

    def w_init(k, cin, cout):
        return 0.1 * jax.random.normal(k, (3, 3, cin, cout), jnp.float32)

    params = {
        "in_w": w_init(keys[0], Cin, Cout),
        "in_b": 0.1 * jax.random.normal(keys[1], (1, Cout), jnp.float32),
        "out_w": w_init(keys[2], Cout, Cout),
        "out_b": 0.1 * jax.random.normal(keys[3], (1, Cout), jnp.float32),
        "blk_w": [], "blk_b": [], "gamma": [], "beta": [],
    }
    for i in range(repeat):
        k0, k1, k2, k3 = jax.random.split(keys[4 + i], 4)
        params["blk_w"].append(w_init(k0, Cout, Cout))
        params["blk_b"].append(0.1 * jax.random.normal(k1, (1, Cout), jnp.float32))
        params["gamma"].append(1.0 + 0.1 * jax.random.normal(k2, (1, Cout), jnp.float32))
        params["beta"].append(0.1 * jax.random.normal(k3, (1, Cout), jnp.float32))

    x = jax.random.normal(keys[-1], (N, Cin, H, W), jnp.float32)   # NCHW like PyTorch

    out = resblock_forward(x, params, repeat=repeat, stride=stride)
    out = jax.block_until_ready(out)

    ref = jax.block_until_ready(resblock_ref(x, params, repeat=repeat, stride=stride))
    assert out.shape == (N, Cout, H // stride, W // stride), out.shape
    # bf16 MXU operands in the kernel (fp32 reference) -> loosened tolerance.
    max_err = float(jnp.max(jnp.abs(out - ref)))
    assert jnp.allclose(out, ref, atol=5e-2, rtol=5e-2), max_err

    print("KERNEL_OK")
</pallas_src>

<mosaic_0001>
module attributes {stable_mosaic.version = 11 : i64} {
  func.func @resblock_kernel(%arg0: i32, %arg1: memref<32x128xf32, #tpu.memory_space<vmem>>, %arg2: memref<3x128x128xbf16, #tpu.memory_space<vmem>>, %arg3: memref<1x128xf32, #tpu.memory_space<vmem>>, %arg4: memref<3x3x128x128xbf16, #tpu.memory_space<vmem>>, %arg5: memref<3x1x128xf32, #tpu.memory_space<vmem>>, %arg6: memref<3x1x128xf32, #tpu.memory_space<vmem>>, %arg7: memref<3x1x128xf32, #tpu.memory_space<vmem>>, %arg8: memref<3x128x128xbf16, #tpu.memory_space<vmem>>, %arg9: memref<1x128xf32, #tpu.memory_space<vmem>>, %arg10: memref<128x128xf32, #tpu.memory_space<vmem>>, %arg11: memref<32x128xf32, #tpu.memory_space<vmem>>, %arg12: memref<36x128xbf16, #tpu.memory_space<vmem>>, %arg13: memref<32x128xf32, #tpu.memory_space<vmem>>) attributes {dimension_semantics = [#tpu.dimension_semantics<arbitrary>], iteration_bounds = array<i64: 1>, scalar_prefetch = 0 : i64, scratch_operands = 2 : i64, tpu.core_type = #tpu.core_type<tc>, window_params = [{pipeline_mode = #tpu.pipeline_mode<synchronous>, transform_indices = @transform_0, window_bounds = array<i64: 32, 128>}, {pipeline_mode = #tpu.pipeline_mode<synchronous>, transform_indices = @transform_1, window_bounds = array<i64: 3, 128, 128>}, {pipeline_mode = #tpu.pipeline_mode<synchronous>, transform_indices = @transform_2, window_bounds = array<i64: 1, 128>}, {pipeline_mode = #tpu.pipeline_mode<synchronous>, transform_indices = @transform_3, window_bounds = array<i64: 3, 3, 128, 128>}, {pipeline_mode = #tpu.pipeline_mode<synchronous>, transform_indices = @transform_4, window_bounds = array<i64: 3, 1, 128>}, {pipeline_mode = #tpu.pipeline_mode<synchronous>, transform_indices = @transform_5, window_bounds = array<i64: 3, 1, 128>}, {pipeline_mode = #tpu.pipeline_mode<synchronous>, transform_indices = @transform_6, window_bounds = array<i64: 3, 1, 128>}, {pipeline_mode = #tpu.pipeline_mode<synchronous>, transform_indices = @transform_7, window_bounds = array<i64: 3, 128, 128>}, {pipeline_mode = #tpu.pipeline_mode<synchronous>, transform_indices = @transform_8, window_bounds = array<i64: 1, 128>}, {pipeline_mode = #tpu.pipeline_mode<synchronous>, transform_indices = @transform_9, window_bounds = array<i64: 128, 128>}, {pipeline_mode = #tpu.pipeline_mode<synchronous>, transform_indices = @transform_10, window_bounds = array<i64: 32, 128>}]} {
    %cst = arith.constant 0.000000e+00 : bf16
    %0 = vector.broadcast %cst : bf16 to vector<36x128xbf16>
    %c0 = arith.constant 0 : index
    %c0_0 = arith.constant 0 : index
    %1 = vector.load %arg12[%c0, %c0_0] : memref<36x128xbf16, #tpu.memory_space<vmem>>, vector<36x128xbf16>
    tpu.vector_store %arg12[%c0, %c0_0], %0 {strides = array<i32>} : memref<36x128xbf16, #tpu.memory_space<vmem>>, vector<36x128xbf16>,
    %c0_1 = arith.constant 0 : index
    %c0_2 = arith.constant 0 : index
    %2 = vector.load %arg1[%c0_1, %c0_2] : memref<32x128xf32, #tpu.memory_space<vmem>>, vector<32x128xf32>
    %3 = arith.truncf %2 : vector<32x128xf32> to vector<32x128xbf16>
    %4 = vector.extract_strided_slice %3 {offsets = [0, 0], sizes = [16, 128], strides = [1, 1]} : vector<32x128xbf16> to vector<16x128xbf16>
    %c1 = arith.constant 1 : index
    %c0_3 = arith.constant 0 : index
    %5 = vector.load %arg12[%c1, %c0_3] : memref<36x128xbf16, #tpu.memory_space<vmem>>, vector<16x128xbf16>
    tpu.vector_store %arg12[%c1, %c0_3], %4 {strides = array<i32>} : memref<36x128xbf16, #tpu.memory_space<vmem>>, vector<16x128xbf16>,
    %6 = vector.extract_strided_slice %3 {offsets = [16, 0], sizes = [16, 128], strides = [1, 1]} : vector<32x128xbf16> to vector<16x128xbf16>
    %c19 = arith.constant 19 : index
    %c0_4 = arith.constant 0 : index
    %7 = vector.load %arg12[%c19, %c0_4] : memref<36x128xbf16, #tpu.memory_space<vmem>>, vector<16x128xbf16>
    tpu.vector_store %arg12[%c19, %c0_4], %6 {strides = array<i32>} : memref<36x128xbf16, #tpu.memory_space<vmem>>, vector<16x128xbf16>,
    %c0_5 = arith.constant 0 : index
    %c0_6 = arith.constant 0 : index
    %8 = vector.load %arg3[%c0_5, %c0_6] : memref<1x128xf32, #tpu.memory_space<vmem>>, vector<1x128xf32>
    %c0_7 = arith.constant 0 : index
    %c0_8 = arith.constant 0 : index
    %c0_9 = arith.constant 0 : index
    %9 = vector.load %arg2[%c0_7, %c0_8, %c0_9] : memref<3x128x128xbf16, #tpu.memory_space<vmem>>, vector<1x128x128xbf16>
    %10 = vector.shape_cast %9 : vector<1x128x128xbf16> to vector<128x128xbf16>
    %c0_10 = arith.constant 0 : index
    %c0_11 = arith.constant 0 : index
    %11 = vector.load %arg12[%c0_10, %c0_11] : memref<36x128xbf16, #tpu.memory_space<vmem>>, vector<16x128xbf16>
    %cst_12 = arith.constant dense<0.000000e+00> : vector<16x128xf32>
    %12 = tpu.matmul %11, %10, %cst_12 {dimension_numbers = #tpu.dot_dimension_numbers<[1], [0], [0], [1], [0, 0, 1, 1], [], []>} : vector<16x128xbf16>, vector<128x128xbf16>, vector<16x128xf32> -> vector<16x128xf32>
    %c18 = arith.constant 18 : index
    %c0_13 = arith.constant 0 : index
    %13 = vector.load %arg12[%c18, %c0_13] : memref<36x128xbf16, #tpu.memory_space<vmem>>, vector<16x128xbf16>
    %cst_14 = arith.constant dense<0.000000e+00> : vector<16x128xf32>
    %14 = tpu.matmul %13, %10, %cst_14 {dimension_numbers = #tpu.dot_dimension_numbers<[1], [0], [0], [1], [0, 0, 1, 1], [], []>} : vector<16x128xbf16>, vector<128x128xbf16>, vector<16x128xf32> -> vector<16x128xf32>
    %c1_15 = arith.constant 1 : index
    %c0_16 = arith.constant 0 : index
    %c0_17 = arith.constant 0 : index
    %15 = vector.load %arg2[%c1_15, %c0_16, %c0_17] : memref<3x128x128xbf16, #tpu.memory_space<vmem>>, vector<1x128x128xbf16>
    %16 = vector.shape_cast %15 : vector<1x128x128xbf16> to vector<128x128xbf16>
    %c1_18 = arith.constant 1 : index
    %c0_19 = arith.constant 0 : index
    %17 = vector.load %arg12[%c1_18, %c0_19] : memref<36x128xbf16, #tpu.memory_space<vmem>>, vector<16x128xbf16>
    %cst_20 = arith.constant dense<0.000000e+00> : vector<16x128xf32>
    %18 = tpu.matmul %17, %16, %cst_20 {dimension_numbers = #tpu.dot_dimension_numbers<[1], [0], [0], [1], [0, 0, 1, 1], [], []>} : vector<16x128xbf16>, vector<128x128xbf16>, vector<16x128xf32> -> vector<16x128xf32>
    %19 = arith.addf %12, %18 : vector<16x128xf32>
    %c19_21 = arith.constant 19 : index
    %c0_22 = arith.constant 0 : index
    %20 = vector.load %arg12[%c19_21, %c0_22] : memref<36x128xbf16, #tpu.memory_space<vmem>>, vector<16x128xbf16>
    %cst_23 = arith.constant dense<0.000000e+00> : vector<16x128xf32>
    %21 = tpu.matmul %20, %16, %cst_23 {dimension_numbers = #tpu.dot_dimension_numbers<[1], [0], [0], [1], [0, 0, 1, 1], [], []>} : vector<16x128xbf16>, vector<128x128xbf16>, vector<16x128xf32> -> vector<16x128xf32>
    %22 = arith.addf %14, %21 : vector<16x128xf32>
    %c2 = arith.constant 2 : index
    %c0_24 = arith.constant 0 : index
    %c0_25 = arith.constant 0 : index
    %23 = vector.load %arg2[%c2, %c0_24, %c0_25] : memref<3x128x128xbf16, #tpu.memory_space<vmem>>, vector<1x128x128xbf16>
    %24 = vector.shape_cast %23 : vector<1x128x128xbf16> to vector<128x128xbf16>
    %c2_26 = arith.constant 2 : index
    %c0_27 = arith.constant 0 : index
    %25 = vector.load %arg12[%c2_26, %c0_27] : memref<36x128xbf16, #tpu.memory_space<vmem>>, vector<16x128xbf16>
    %cst_28 = arith.constant dense<0.000000e+00> : vector<16x128xf32>
    %26 = tpu.matmul %25, %24, %cst_28 {dimension_numbers = #tpu.dot_dimension_numbers<[1], [0], [0], [1], [0, 0, 1, 1], [], []>} : vector<16x128xbf16>, vector<128x128xbf16>, vector<16x128xf32> -> vector<16x128xf32>
    %27 = arith.addf %19, %26 : vector<16x128xf32>
    %c20 = arith.constant 20 : index
    %c0_29 = arith.constant 0 : index
    %28 = vector.load %arg12[%c20, %c0_29] : memref<36x128xbf16, #tpu.memory_space<vmem>>, vector<16x128xbf16>
    %cst_30 = arith.constant dense<0.000000e+00> : vector<16x128xf32>
    %29 = tpu.matmul %28, %24, %cst_30 {dimension_numbers = #tpu.dot_dimension_numbers<[1], [0], [0], [1], [0, 0, 1, 1], [], []>} : vector<16x128xbf16>, vector<128x128xbf16>, vector<16x128xf32> -> vector<16x128xf32>
    %30 = arith.addf %22, %29 : vector<16x128xf32>
    %31 = tpu.concatenate %27, %30 in 0 : vector<16x128xf32>, vector<16x128xf32> -> vector<32x128xf32>
    %32 = vector.broadcast %8 : vector<1x128xf32> to vector<32x128xf32>
    %33 = arith.addf %31, %32 : vector<32x128xf32>
    %c0_31 = arith.constant 0 : index
    %c0_32 = arith.constant 0 : index
    %34 = vector.load %arg13[%c0_31, %c0_32] : memref<32x128xf32, #tpu.memory_space<vmem>>, vector<32x128xf32>
    tpu.vector_store %arg13[%c0_31, %c0_32], %33 {strides = array<i32>} : memref<32x128xf32, #tpu.memory_space<vmem>>, vector<32x128xf32>,
    %cst_33 = arith.constant 1.000000e+00 : f32
    %35 = vector.broadcast %cst_33 : f32 to vector<1x32xf32>
    %c0_34 = arith.constant 0 : index
    %c0_35 = arith.constant 0 : index
    %36 = vector.load %arg10[%c0_34, %c0_35] : memref<128x128xf32, #tpu.memory_space<vmem>>, vector<128x128xf32>
    %c0_36 = arith.constant 0 : index
    %c0_37 = arith.constant 0 : index
    %37 = vector.load %arg13[%c0_36, %c0_37] : memref<32x128xf32, #tpu.memory_space<vmem>>, vector<32x128xf32>
    %38 = arith.truncf %37 : vector<32x128xf32> to vector<32x128xbf16>
    %39 = vector.extract_strided_slice %38 {offsets = [0, 0], sizes = [16, 128], strides = [1, 1]} : vector<32x128xbf16> to vector<16x128xbf16>
    %c1_38 = arith.constant 1 : index
    %c0_39 = arith.constant 0 : index
    %40 = vector.load %arg12[%c1_38, %c0_39] : memref<36x128xbf16, #tpu.memory_space<vmem>>, vector<16x128xbf16>
    tpu.vector_store %arg12[%c1_38, %c0_39], %39 {strides = array<i32>} : memref<36x128xbf16, #tpu.memory_space<vmem>>, vector<16x128xbf16>,
    %41 = vector.extract_strided_slice %38 {offsets = [16, 0], sizes = [16, 128], strides = [1, 1]} : vector<32x128xbf16> to vector<16x128xbf16>
    %c19_40 = arith.constant 19 : index
    %c0_41 = arith.constant 0 : index
    %42 = vector.load %arg12[%c19_40, %c0_41] : memref<36x128xbf16, #tpu.memory_space<vmem>>, vector<16x128xbf16>
    tpu.vector_store %arg12[%c19_40, %c0_41], %41 {strides = array<i32>} : memref<36x128xbf16, #tpu.memory_space<vmem>>, vector<16x128xbf16>,
    %c0_42 = arith.constant 0 : index
    %c0_43 = arith.constant 0 : index
    %c0_44 = arith.constant 0 : index
    %43 = vector.load %arg5[%c0_42, %c0_43, %c0_44] : memref<3x1x128xf32, #tpu.memory_space<vmem>>, vector<1x1x128xf32>
    %44 = vector.shape_cast %43 : vector<1x1x128xf32> to vector<1x128xf32>
    %c0_45 = arith.constant 0 : index
    %c0_46 = arith.constant 0 : index
    %c0_47 = arith.constant 0 : index
    %c0_48 = arith.constant 0 : index
    %45 = vector.load %arg4[%c0_45, %c0_46, %c0_47, %c0_48] : memref<3x3x128x128xbf16, #tpu.memory_space<vmem>>, vector<1x1x128x128xbf16>
    %46 = vector.shape_cast %45 : vector<1x1x128x128xbf16> to vector<128x128xbf16>
    %c0_49 = arith.constant 0 : index
    %c0_50 = arith.constant 0 : index
    %47 = vector.load %arg12[%c0_49, %c0_50] : memref<36x128xbf16, #tpu.memory_space<vmem>>, vector<16x128xbf16>
    %cst_51 = arith.constant dense<0.000000e+00> : vector<16x128xf32>
    %48 = tpu.matmul %47, %46, %cst_51 {dimension_numbers = #tpu.dot_dimension_numbers<[1], [0], [0], [1], [0, 0, 1, 1], [], []>} : vector<16x128xbf16>, vector<128x128xbf16>, vector<16x128xf32> -> vector<16x128xf32>
    %c18_52 = arith.constant 18 : index
    %c0_53 = arith.constant 0 : index
    %49 = vector.load %arg12[%c18_52, %c0_53] : memref<36x128xbf16, #tpu.memory_space<vmem>>, vector<16x128xbf16>
    %cst_54 = arith.constant dense<0.000000e+00> : vector<16x128xf32>
    %50 = tpu.matmul %49, %46, %cst_54 {dimension_numbers = #tpu.dot_dimension_numbers<[1], [0], [0], [1], [0, 0, 1, 1], [], []>} : vector<16x128xbf16>, vector<128x128xbf16>, vector<16x128xf32> -> vector<16x128xf32>
    %c0_55 = arith.constant 0 : index
    %c1_56 = arith.constant 1 : index
    %c0_57 = arith.constant 0 : index
    %c0_58 = arith.constant 0 : index
    %51 = vector.load %arg4[%c0_55, %c1_56, %c0_57, %c0_58] : memref<3x3x128x128xbf16, #tpu.memory_space<vmem>>, vector<1x1x128x128xbf16>
    %52 = vector.shape_cast %51 : vector<1x1x128x128xbf16> to vector<128x128xbf16>
    %c1_59 = arith.constant 1 : index
    %c0_60 = arith.constant 0 : index
    %53 = vector.load %arg12[%c1_59, %c0_60] : memref<36x128xbf16, #tpu.memory_space<vmem>>, vector<16x128xbf16>
    %cst_61 = arith.constant dense<0.000000e+00> : vector<16x128xf32>
    %54 = tpu.matmul %53, %52, %cst_61 {dimension_numbers = #tpu.dot_dimension_numbers<[1], [0], [0], [1], [0, 0, 1, 1], [], []>} : vector<16x128xbf16>, vector<128x128xbf16>, vector<16x128xf32> -> vector<16x128xf32>
    %55 = arith.addf %48, %54 : vector<16x128xf32>
    %c19_62 = arith.constant 19 : index
    %c0_63 = arith.constant 0 : index
    %56 = vector.load %arg12[%c19_62, %c0_63] : memref<36x128xbf16, #tpu.memory_space<vmem>>, vector<16x128xbf16>
    %cst_64 = arith.constant dense<0.000000e+00> : vector<16x128xf32>
    %57 = tpu.matmul %56, %52, %cst_64 {dimension_numbers = #tpu.dot_dimension_numbers<[1], [0], [0], [1], [0, 0, 1, 1], [], []>} : vector<16x128xbf16>, vector<128x128xbf16>, vector<16x128xf32> -> vector<16x128xf32>
    %58 = arith.addf %50, %57 : vector<16x128xf32>
    %c0_65 = arith.constant 0 : index
    %c2_66 = arith.constant 2 : index
    %c0_67 = arith.constant 0 : index
    %c0_68 = arith.constant 0 : index
    %59 = vector.load %arg4[%c0_65, %c2_66, %c0_67, %c0_68] : memref<3x3x128x128xbf16, #tpu.memory_space<vmem>>, vector<1x1x128x128xbf16>
    %60 = vector.shape_cast %59 : vector<1x1x128x128xbf16> to vector<128x128xbf16>
    %c2_69 = arith.constant 2 : index
    %c0_70 = arith.constant 0 : index
    %61 = vector.load %arg12[%c2_69, %c0_70] : memref<36x128xbf16, #tpu.memory_space<vmem>>, vector<16x128xbf16>
    %cst_71 = arith.constant dense<0.000000e+00> : vector<16x128xf32>
    %62 = tpu.matmul %61, %60, %cst_71 {dimension_numbers = #tpu.dot_dimension_numbers<[1], [0], [0], [1], [0, 0, 1, 1], [], []>} : vector<16x128xbf16>, vector<128x128xbf16>, vector<16x128xf32> -> vector<16x128xf32>
    %63 = arith.addf %55, %62 : vector<16x128xf32>
    %c20_72 = arith.constant 20 : index
    %c0_73 = arith.constant 0 : index
    %64 = vector.load %arg12[%c20_72, %c0_73] : memref<36x128xbf16, #tpu.memory_space<vmem>>, vector<16x128xbf16>
    %cst_74 = arith.constant dense<0.000000e+00> : vector<16x128xf32>
    %65 = tpu.matmul %64, %60, %cst_74 {dimension_numbers = #tpu.dot_dimension_numbers<[1], [0], [0], [1], [0, 0, 1, 1], [], []>} : vector<16x128xbf16>, vector<128x128xbf16>, vector<16x128xf32> -> vector<16x128xf32>
    %66 = arith.addf %58, %65 : vector<16x128xf32>
    %67 = tpu.concatenate %63, %66 in 0 : vector<16x128xf32>, vector<16x128xf32> -> vector<32x128xf32>
    %68 = vector.broadcast %44 : vector<1x128xf32> to vector<32x128xf32>
    %69 = arith.addf %67, %68 : vector<32x128xf32>
    %cst_75 = arith.constant dense<0.000000e+00> : vector<1x128xf32>
    %70 = tpu.matmul %35, %69, %cst_75 {dimension_numbers = #tpu.dot_dimension_numbers<[1], [0], [0], [1], [0, 0, 1, 1], [], []>} : vector<1x32xf32>, vector<32x128xf32>, vector<1x128xf32> -> vector<1x128xf32>
    %cst_76 = arith.constant dense<0.000000e+00> : vector<1x128xf32>
    %71 = tpu.matmul %70, %36, %cst_76 {dimension_numbers = #tpu.dot_dimension_numbers<[1], [0], [0], [1], [0, 0, 1, 1], [], []>} : vector<1x128xf32>, vector<128x128xf32>, vector<1x128xf32> -> vector<1x128xf32>
    %72 = vector.broadcast %71 : vector<1x128xf32> to vector<32x128xf32>
    %73 = arith.subf %69, %72 : vector<32x128xf32>
    %74 = arith.mulf %73, %73 : vector<32x128xf32>
    %cst_77 = arith.constant dense<0.000000e+00> : vector<1x128xf32>
    %75 = tpu.matmul %35, %74, %cst_77 {dimension_numbers = #tpu.dot_dimension_numbers<[1], [0], [0], [1], [0, 0, 1, 1], [], []>} : vector<1x32xf32>, vector<32x128xf32>, vector<1x128xf32> -> vector<1x128xf32>
    %cst_78 = arith.constant dense<0.000000e+00> : vector<1x128xf32>
    %76 = tpu.matmul %75, %36, %cst_78 {dimension_numbers = #tpu.dot_dimension_numbers<[1], [0], [0], [1], [0, 0, 1, 1], [], []>} : vector<1x128xf32>, vector<128x128xf32>, vector<1x128xf32> -> vector<1x128xf32>
    %cst_79 = arith.constant 9.99999974E-6 : f32
    %77 = vector.broadcast %cst_79 : f32 to vector<1x128xf32>
    %78 = arith.addf %76, %77 : vector<1x128xf32>
    %79 = math.rsqrt %78 : vector<1x128xf32>
    %80 = vector.broadcast %79 : vector<1x128xf32> to vector<32x128xf32>
    %81 = arith.mulf %73, %80 : vector<32x128xf32>
    %c0_80 = arith.constant 0 : index
    %c0_81 = arith.constant 0 : index
    %c0_82 = arith.constant 0 : index
    %82 = vector.load %arg6[%c0_80, %c0_81, %c0_82] : memref<3x1x128xf32, #tpu.memory_space<vmem>>, vector<1x1x128xf32>
    %83 = vector.shape_cast %82 : vector<1x1x128xf32> to vector<1x128xf32>
    %84 = vector.broadcast %83 : vector<1x128xf32> to vector<32x128xf32>
    %85 = arith.mulf %81, %84 : vector<32x128xf32>
    %c0_83 = arith.constant 0 : index
    %c0_84 = arith.constant 0 : index
    %c0_85 = arith.constant 0 : index
    %86 = vector.load %arg7[%c0_83, %c0_84, %c0_85] : memref<3x1x128xf32, #tpu.memory_space<vmem>>, vector<1x1x128xf32>
    %87 = vector.shape_cast %86 : vector<1x1x128xf32> to vector<1x128xf32>
    %88 = vector.broadcast %87 : vector<1x128xf32> to vector<32x128xf32>
    %89 = arith.addf %85, %88 : vector<32x128xf32>
    %cst_86 = arith.constant 0.000000e+00 : f32
    %90 = vector.broadcast %cst_86 : f32 to vector<32x128xf32>
    %91 = arith.maximumf %89, %90 : vector<32x128xf32>
    %92 = arith.addf %91, %37 : vector<32x128xf32>
    %c0_87 = arith.constant 0 : index
    %c0_88 = arith.constant 0 : index
    %93 = vector.load %arg13[%c0_87, %c0_88] : memref<32x128xf32, #tpu.memory_space<vmem>>, vector<32x128xf32>
    tpu.vector_store %arg13[%c0_87, %c0_88], %92 {strides = array<i32>} : memref<32x128xf32, #tpu.memory_space<vmem>>, vector<32x128xf32>,
    %c0_89 = arith.constant 0 : index
    %c0_90 = arith.constant 0 : index
    %94 = vector.load %arg13[%c0_89, %c0_90] : memref<32x128xf32, #tpu.memory_space<vmem>>, vector<32x128xf32>
    %95 = arith.truncf %94 : vector<32x128xf32> to vector<32x128xbf16>
    %96 = vector.extract_strided_slice %95 {offsets = [0, 0], sizes = [16, 128], strides = [1, 1]} : vector<32x128xbf16> to vector<16x128xbf16>
    %c1_91 = arith.constant 1 : index
    %c0_92 = arith.constant 0 : index
    %97 = vector.load %arg12[%c1_91, %c0_92] : memref<36x128xbf16, #tpu.memory_space<vmem>>, vector<16x128xbf16>
    tpu.vector_store %arg12[%c1_91, %c0_92], %96 {strides = array<i32>} : memref<36x128xbf16, #tpu.memory_space<vmem>>, vector<16x128xbf16>,
    %98 = vector.extract_strided_slice %95 {offsets = [16, 0], sizes = [16, 128], strides = [1, 1]} : vector<32x128xbf16> to vector<16x128xbf16>
    %c19_93 = arith.constant 19 : index
    %c0_94 = arith.constant 0 : index
    %99 = vector.load %arg12[%c19_93, %c0_94] : memref<36x128xbf16, #tpu.memory_space<vmem>>, vector<16x128xbf16>
    tpu.vector_store %arg12[%c19_93, %c0_94], %98 {strides = array<i32>} : memref<36x128xbf16, #tpu.memory_space<vmem>>, vector<16x128xbf16>,
    %c1_95 = arith.constant 1 : index
    %c0_96 = arith.constant 0 : index
    %c0_97 = arith.constant 0 : index
    %100 = vector.load %arg5[%c1_95, %c0_96, %c0_97] : memref<3x1x128xf32, #tpu.memory_space<vmem>>, vector<1x1x128xf32>
    %101 = vector.shape_cast %100 : vector<1x1x128xf32> to vector<1x128xf32>
    %c1_98 = arith.constant 1 : index
    %c0_99 = arith.constant 0 : index
    %c0_100 = arith.constant 0 : index
    %c0_101 = arith.constant 0 : index
    %102 = vector.load %arg4[%c1_98, %c0_99, %c0_100, %c0_101] : memref<3x3x128x128xbf16, #tpu.memory_space<vmem>>, vector<1x1x128x128xbf16>
    %103 = vector.shape_cast %102 : vector<1x1x128x128xbf16> to vector<128x128xbf16>
    %c0_102 = arith.constant 0 : index
    %c0_103 = arith.constant 0 : index
    %104 = vector.load %arg12[%c0_102, %c0_103] : memref<36x128xbf16, #tpu.memory_space<vmem>>, vector<16x128xbf16>
    %cst_104 = arith.constant dense<0.000000e+00> : vector<16x128xf32>
    %105 = tpu.matmul %104, %103, %cst_104 {dimension_numbers = #tpu.dot_dimension_numbers<[1], [0], [0], [1], [0, 0, 1, 1], [], []>} : vector<16x128xbf16>, vector<128x128xbf16>, vector<16x128xf32> -> vector<16x128xf32>
    %c18_105 = arith.constant 18 : index
    %c0_106 = arith.constant 0 : index
    %106 = vector.load %arg12[%c18_105, %c0_106] : memref<36x128xbf16, #tpu.memory_space<vmem>>, vector<16x128xbf16>
    %cst_107 = arith.constant dense<0.000000e+00> : vector<16x128xf32>
    %107 = tpu.matmul %106, %103, %cst_107 {dimension_numbers = #tpu.dot_dimension_numbers<[1], [0], [0], [1], [0, 0, 1, 1], [], []>} : vector<16x128xbf16>, vector<128x128xbf16>, vector<16x128xf32> -> vector<16x128xf32>
    %c1_108 = arith.constant 1 : index
    %c1_109 = arith.constant 1 : index
    %c0_110 = arith.constant 0 : index
    %c0_111 = arith.constant 0 : index
    %108 = vector.load %arg4[%c1_108, %c1_109, %c0_110, %c0_111] : memref<3x3x128x128xbf16, #tpu.memory_space<vmem>>, vector<1x1x128x128xbf16>
    %109 = vector.shape_cast %108 : vector<1x1x128x128xbf16> to vector<128x128xbf16>
    %c1_112 = arith.constant 1 : index
    %c0_113 = arith.constant 0 : index
    %110 = vector.load %arg12[%c1_112, %c0_113] : memref<36x128xbf16, #tpu.memory_space<vmem>>, vector<16x128xbf16>
    %cst_114 = arith.constant dense<0.000000e+00> : vector<16x128xf32>
    %111 = tpu.matmul %110, %109, %cst_114 {dimension_numbers = #tpu.dot_dimension_numbers<[1], [0], [0], [1], [0, 0, 1, 1], [], []>} : vector<16x128xbf16>, vector<128x128xbf16>, vector<16x128xf32> -> vector<16x128xf32>
    %112 = arith.addf %105, %111 : vector<16x128xf32>
    %c19_115 = arith.constant 19 : index
    %c0_116 = arith.constant 0 : index
    %113 = vector.load %arg12[%c19_115, %c0_116] : memref<36x128xbf16, #tpu.memory_space<vmem>>, vector<16x128xbf16>
    %cst_117 = arith.constant dense<0.000000e+00> : vector<16x128xf32>
    %114 = tpu.matmul %113, %109, %cst_117 {dimension_numbers = #tpu.dot_dimension_numbers<[1], [0], [0], [1], [0, 0, 1, 1], [], []>} : vector<16x128xbf16>, vector<128x128xbf16>, vector<16x128xf32> -> vector<16x128xf32>
    %115 = arith.addf %107, %114 : vector<16x128xf32>
    %c1_118 = arith.constant 1 : index
    %c2_119 = arith.constant 2 : index
    %c0_120 = arith.constant 0 : index
    %c0_121 = arith.constant 0 : index
    %116 = vector.load %arg4[%c1_118, %c2_119, %c0_120, %c0_121] : memref<3x3x128x128xbf16, #tpu.memory_space<vmem>>, vector<1x1x128x128xbf16>
    %117 = vector.shape_cast %116 : vector<1x1x128x128xbf16> to vector<128x128xbf16>
    %c2_122 = arith.constant 2 : index
    %c0_123 = arith.constant 0 : index
    %118 = vector.load %arg12[%c2_122, %c0_123] : memref<36x128xbf16, #tpu.memory_space<vmem>>, vector<16x128xbf16>
    %cst_124 = arith.constant dense<0.000000e+00> : vector<16x128xf32>
    %119 = tpu.matmul %118, %117, %cst_124 {dimension_numbers = #tpu.dot_dimension_numbers<[1], [0], [0], [1], [0, 0, 1, 1], [], []>} : vector<16x128xbf16>, vector<128x128xbf16>, vector<16x128xf32> -> vector<16x128xf32>
    %120 = arith.addf %112, %119 : vector<16x128xf32>
    %c20_125 = arith.constant 20 : index
    %c0_126 = arith.constant 0 : index
    %121 = vector.load %arg12[%c20_125, %c0_126] : memref<36x128xbf16, #tpu.memory_space<vmem>>, vector<16x128xbf16>
    %cst_127 = arith.constant dense<0.000000e+00> : vector<16x128xf32>
    %122 = tpu.matmul %121, %117, %cst_127 {dimension_numbers = #tpu.dot_dimension_numbers<[1], [0], [0], [1], [0, 0, 1, 1], [], []>} : vector<16x128xbf16>, vector<128x128xbf16>, vector<16x128xf32> -> vector<16x128xf32>
    %123 = arith.addf %115, %122 : vector<16x128xf32>
    %124 = tpu.concatenate %120, %123 in 0 : vector<16x128xf32>, vector<16x128xf32> -> vector<32x128xf32>
    %125 = vector.broadcast %101 : vector<1x128xf32> to vector<32x128xf32>
    %126 = arith.addf %124, %125 : vector<32x128xf32>
    %cst_128 = arith.constant dense<0.000000e+00> : vector<1x128xf32>
    %127 = tpu.matmul %35, %126, %cst_128 {dimension_numbers = #tpu.dot_dimension_numbers<[1], [0], [0], [1], [0, 0, 1, 1], [], []>} : vector<1x32xf32>, vector<32x128xf32>, vector<1x128xf32> -> vector<1x128xf32>
    %cst_129 = arith.constant dense<0.000000e+00> : vector<1x128xf32>
    %128 = tpu.matmul %127, %36, %cst_129 {dimension_numbers = #tpu.dot_dimension_numbers<[1], [0], [0], [1], [0, 0, 1, 1], [], []>} : vector<1x128xf32>, vector<128x128xf32>, vector<1x128xf32> -> vector<1x128xf32>
    %129 = vector.broadcast %128 : vector<1x128xf32> to vector<32x128xf32>
    %130 = arith.subf %126, %129 : vector<32x128xf32>
    %131 = arith.mulf %130, %130 : vector<32x128xf32>
    %cst_130 = arith.constant dense<0.000000e+00> : vector<1x128xf32>
    %132 = tpu.matmul %35, %131, %cst_130 {dimension_numbers = #tpu.dot_dimension_numbers<[1], [0], [0], [1], [0, 0, 1, 1], [], []>} : vector<1x32xf32>, vector<32x128xf32>, vector<1x128xf32> -> vector<1x128xf32>
    %cst_131 = arith.constant dense<0.000000e+00> : vector<1x128xf32>
    %133 = tpu.matmul %132, %36, %cst_131 {dimension_numbers = #tpu.dot_dimension_numbers<[1], [0], [0], [1], [0, 0, 1, 1], [], []>} : vector<1x128xf32>, vector<128x128xf32>, vector<1x128xf32> -> vector<1x128xf32>
    %cst_132 = arith.constant 9.99999974E-6 : f32
    %134 = vector.broadcast %cst_132 : f32 to vector<1x128xf32>
    %135 = arith.addf %133, %134 : vector<1x128xf32>
    %136 = math.rsqrt %135 : vector<1x128xf32>
    %137 = vector.broadcast %136 : vector<1x128xf32> to vector<32x128xf32>
    %138 = arith.mulf %130, %137 : vector<32x128xf32>
    %c1_133 = arith.constant 1 : index
    %c0_134 = arith.constant 0 : index
    %c0_135 = arith.constant 0 : index
    %139 = vector.load %arg6[%c1_133, %c0_134, %c0_135] : memref<3x1x128xf32, #tpu.memory_space<vmem>>, vector<1x1x128xf32>
    %140 = vector.shape_cast %139 : vector<1x1x128xf32> to vector<1x128xf32>
    %141 = vector.broadcast %140 : vector<1x128xf32> to vector<32x128xf32>
    %142 = arith.mulf %138, %141 : vector<32x128xf32>
    %c1_136 = arith.constant 1 : index
    %c0_137 = arith.constant 0 : index
    %c0_138 = arith.constant 0 : index
    %143 = vector.load %arg7[%c1_136, %c0_137, %c0_138] : memref<3x1x128xf32, #tpu.memory_space<vmem>>, vector<1x1x128xf32>
    %144 = vector.shape_cast %143 : vector<1x1x128xf32> to vector<1x128xf32>
    %145 = vector.broadcast %144 : vector<1x128xf32> to vector<32x128xf32>
    %146 = arith.addf %142, %145 : vector<32x128xf32>
    %cst_139 = arith.constant 0.000000e+00 : f32
    %147 = vector.broadcast %cst_139 : f32 to vector<32x128xf32>
    %148 = arith.maximumf %146, %147 : vector<32x128xf32>
    %149 = arith.addf %148, %94 : vector<32x128xf32>
    %c0_140 = arith.constant 0 : index
    %c0_141 = arith.constant 0 : index
    %150 = vector.load %arg13[%c0_140, %c0_141] : memref<32x128xf32, #tpu.memory_space<vmem>>, vector<32x128xf32>
    tpu.vector_store %arg13[%c0_140, %c0_141], %149 {strides = array<i32>} : memref<32x128xf32, #tpu.memory_space<vmem>>, vector<32x128xf32>,
    %c0_142 = arith.constant 0 : index
    %c0_143 = arith.constant 0 : index
    %151 = vector.load %arg13[%c0_142, %c0_143] : memref<32x128xf32, #tpu.memory_space<vmem>>, vector<32x128xf32>
    %152 = arith.truncf %151 : vector<32x128xf32> to vector<32x128xbf16>
    %153 = vector.extract_strided_slice %152 {offsets = [0, 0], sizes = [16, 128], strides = [1, 1]} : vector<32x128xbf16> to vector<16x128xbf16>
    %c1_144 = arith.constant 1 : index
    %c0_145 = arith.constant 0 : index
    %154 = vector.load %arg12[%c1_144, %c0_145] : memref<36x128xbf16, #tpu.memory_space<vmem>>, vector<16x128xbf16>
    tpu.vector_store %arg12[%c1_144, %c0_145], %153 {strides = array<i32>} : memref<36x128xbf16, #tpu.memory_space<vmem>>, vector<16x128xbf16>,
    %155 = vector.extract_strided_slice %152 {offsets = [16, 0], sizes = [16, 128], strides = [1, 1]} : vector<32x128xbf16> to vector<16x128xbf16>
    %c19_146 = arith.constant 19 : index
    %c0_147 = arith.constant 0 : index
    %156 = vector.load %arg12[%c19_146, %c0_147] : memref<36x128xbf16, #tpu.memory_space<vmem>>, vector<16x128xbf16>
    tpu.vector_store %arg12[%c19_146, %c0_147], %155 {strides = array<i32>} : memref<36x128xbf16, #tpu.memory_space<vmem>>, vector<16x128xbf16>,
    %c2_148 = arith.constant 2 : index
    %c0_149 = arith.constant 0 : index
    %c0_150 = arith.constant 0 : index
    %157 = vector.load %arg5[%c2_148, %c0_149, %c0_150] : memref<3x1x128xf32, #tpu.memory_space<vmem>>, vector<1x1x128xf32>
    %158 = vector.shape_cast %157 : vector<1x1x128xf32> to vector<1x128xf32>
    %c2_151 = arith.constant 2 : index
    %c0_152 = arith.constant 0 : index
    %c0_153 = arith.constant 0 : index
    %c0_154 = arith.constant 0 : index
    %159 = vector.load %arg4[%c2_151, %c0_152, %c0_153, %c0_154] : memref<3x3x128x128xbf16, #tpu.memory_space<vmem>>, vector<1x1x128x128xbf16>
    %160 = vector.shape_cast %159 : vector<1x1x128x128xbf16> to vector<128x128xbf16>
    %c0_155 = arith.constant 0 : index
    %c0_156 = arith.constant 0 : index
    %161 = vector.load %arg12[%c0_155, %c0_156] : memref<36x128xbf16, #tpu.memory_space<vmem>>, vector<16x128xbf16>
    %cst_157 = arith.constant dense<0.000000e+00> : vector<16x128xf32>
    %162 = tpu.matmul %161, %160, %cst_157 {dimension_numbers = #tpu.dot_dimension_numbers<[1], [0], [0], [1], [0, 0, 1, 1], [], []>} : vector<16x128xbf16>, vector<128x128xbf16>, vector<16x128xf32> -> vector<16x128xf32>
    %c18_158 = arith.constant 18 : index
    %c0_159 = arith.constant 0 : index
    %163 = vector.load %arg12[%c18_158, %c0_159] : memref<36x128xbf16, #tpu.memory_space<vmem>>, vector<16x128xbf16>
    %cst_160 = arith.constant dense<0.000000e+00> : vector<16x128xf32>
    %164 = tpu.matmul %163, %160, %cst_160 {dimension_numbers = #tpu.dot_dimension_numbers<[1], [0], [0], [1], [0, 0, 1, 1], [], []>} : vector<16x128xbf16>, vector<128x128xbf16>, vector<16x128xf32> -> vector<16x128xf32>
    %c2_161 = arith.constant 2 : index
    %c1_162 = arith.constant 1 : index
    %c0_163 = arith.constant 0 : index
    %c0_164 = arith.constant 0 : index
    %165 = vector.load %arg4[%c2_161, %c1_162, %c0_163, %c0_164] : memref<3x3x128x128xbf16, #tpu.memory_space<vmem>>, vector<1x1x128x128xbf16>
    %166 = vector.shape_cast %165 : vector<1x1x128x128xbf16> to vector<128x128xbf16>
    %c1_165 = arith.constant 1 : index
    %c0_166 = arith.constant 0 : index
    %167 = vector.load %arg12[%c1_165, %c0_166] : memref<36x128xbf16, #tpu.memory_space<vmem>>, vector<16x128xbf16>
    %cst_167 = arith.constant dense<0.000000e+00> : vector<16x128xf32>
    %168 = tpu.matmul %167, %166, %cst_167 {dimension_numbers = #tpu.dot_dimension_numbers<[1], [0], [0], [1], [0, 0, 1, 1], [], []>} : vector<16x128xbf16>, vector<128x128xbf16>, vector<16x128xf32> -> vector<16x128xf32>
    %169 = arith.addf %162, %168 : vector<16x128xf32>
    %c19_168 = arith.constant 19 : index
    %c0_169 = arith.constant 0 : index
    %170 = vector.load %arg12[%c19_168, %c0_169] : memref<36x128xbf16, #tpu.memory_space<vmem>>, vector<16x128xbf16>
    %cst_170 = arith.constant dense<0.000000e+00> : vector<16x128xf32>
    %171 = tpu.matmul %170, %166, %cst_170 {dimension_numbers = #tpu.dot_dimension_numbers<[1], [0], [0], [1], [0, 0, 1, 1], [], []>} : vector<16x128xbf16>, vector<128x128xbf16>, vector<16x128xf32> -> vector<16x128xf32>
    %172 = arith.addf %164, %171 : vector<16x128xf32>
    %c2_171 = arith.constant 2 : index
    %c2_172 = arith.constant 2 : index
    %c0_173 = arith.constant 0 : index
    %c0_174 = arith.constant 0 : index
    %173 = vector.load %arg4[%c2_171, %c2_172, %c0_173, %c0_174] : memref<3x3x128x128xbf16, #tpu.memory_space<vmem>>, vector<1x1x128x128xbf16>
    %174 = vector.shape_cast %173 : vector<1x1x128x128xbf16> to vector<128x128xbf16>
    %c2_175 = arith.constant 2 : index
    %c0_176 = arith.constant 0 : index
    %175 = vector.load %arg12[%c2_175, %c0_176] : memref<36x128xbf16, #tpu.memory_space<vmem>>, vector<16x128xbf16>
    %cst_177 = arith.constant dense<0.000000e+00> : vector<16x128xf32>
    %176 = tpu.matmul %175, %174, %cst_177 {dimension_numbers = #tpu.dot_dimension_numbers<[1], [0], [0], [1], [0, 0, 1, 1], [], []>} : vector<16x128xbf16>, vector<128x128xbf16>, vector<16x128xf32> -> vector<16x128xf32>
    %177 = arith.addf %169, %176 : vector<16x128xf32>
    %c20_178 = arith.constant 20 : index
    %c0_179 = arith.constant 0 : index
    %178 = vector.load %arg12[%c20_178, %c0_179] : memref<36x128xbf16, #tpu.memory_space<vmem>>, vector<16x128xbf16>
    %cst_180 = arith.constant dense<0.000000e+00> : vector<16x128xf32>
    %179 = tpu.matmul %178, %174, %cst_180 {dimension_numbers = #tpu.dot_dimension_numbers<[1], [0], [0], [1], [0, 0, 1, 1], [], []>} : vector<16x128xbf16>, vector<128x128xbf16>, vector<16x128xf32> -> vector<16x128xf32>
    %180 = arith.addf %172, %179 : vector<16x128xf32>
    %181 = tpu.concatenate %177, %180 in 0 : vector<16x128xf32>, vector<16x128xf32> -> vector<32x128xf32>
    %182 = vector.broadcast %158 : vector<1x128xf32> to vector<32x128xf32>
    %183 = arith.addf %181, %182 : vector<32x128xf32>
    %cst_181 = arith.constant dense<0.000000e+00> : vector<1x128xf32>
    %184 = tpu.matmul %35, %183, %cst_181 {dimension_numbers = #tpu.dot_dimension_numbers<[1], [0], [0], [1], [0, 0, 1, 1], [], []>} : vector<1x32xf32>, vector<32x128xf32>, vector<1x128xf32> -> vector<1x128xf32>
    %cst_182 = arith.constant dense<0.000000e+00> : vector<1x128xf32>
    %185 = tpu.matmul %184, %36, %cst_182 {dimension_numbers = #tpu.dot_dimension_numbers<[1], [0], [0], [1], [0, 0, 1, 1], [], []>} : vector<1x128xf32>, vector<128x128xf32>, vector<1x128xf32> -> vector<1x128xf32>
    %186 = vector.broadcast %185 : vector<1x128xf32> to vector<32x128xf32>
    %187 = arith.subf %183, %186 : vector<32x128xf32>
    %188 = arith.mulf %187, %187 : vector<32x128xf32>
    %cst_183 = arith.constant dense<0.000000e+00> : vector<1x128xf32>
    %189 = tpu.matmul %35, %188, %cst_183 {dimension_numbers = #tpu.dot_dimension_numbers<[1], [0], [0], [1], [0, 0, 1, 1], [], []>} : vector<1x32xf32>, vector<32x128xf32>, vector<1x128xf32> -> vector<1x128xf32>
    %cst_184 = arith.constant dense<0.000000e+00> : vector<1x128xf32>
    %190 = tpu.matmul %189, %36, %cst_184 {dimension_numbers = #tpu.dot_dimension_numbers<[1], [0], [0], [1], [0, 0, 1, 1], [], []>} : vector<1x128xf32>, vector<128x128xf32>, vector<1x128xf32> -> vector<1x128xf32>
    %cst_185 = arith.constant 9.99999974E-6 : f32
    %191 = vector.broadcast %cst_185 : f32 to vector<1x128xf32>
    %192 = arith.addf %190, %191 : vector<1x128xf32>
    %193 = math.rsqrt %192 : vector<1x128xf32>
    %194 = vector.broadcast %193 : vector<1x128xf32> to vector<32x128xf32>
    %195 = arith.mulf %187, %194 : vector<32x128xf32>
    %c2_186 = arith.constant 2 : index
    %c0_187 = arith.constant 0 : index
    %c0_188 = arith.constant 0 : index
    %196 = vector.load %arg6[%c2_186, %c0_187, %c0_188] : memref<3x1x128xf32, #tpu.memory_space<vmem>>, vector<1x1x128xf32>
    %197 = vector.shape_cast %196 : vector<1x1x128xf32> to vector<1x128xf32>
    %198 = vector.broadcast %197 : vector<1x128xf32> to vector<32x128xf32>
    %199 = arith.mulf %195, %198 : vector<32x128xf32>
    %c2_189 = arith.constant 2 : index
    %c0_190 = arith.constant 0 : index
    %c0_191 = arith.constant 0 : index
    %200 = vector.load %arg7[%c2_189, %c0_190, %c0_191] : memref<3x1x128xf32, #tpu.memory_space<vmem>>, vector<1x1x128xf32>
    %201 = vector.shape_cast %200 : vector<1x1x128xf32> to vector<1x128xf32>
    %202 = vector.broadcast %201 : vector<1x128xf32> to vector<32x128xf32>
    %203 = arith.addf %199, %202 : vector<32x128xf32>
    %cst_192 = arith.constant 0.000000e+00 : f32
    %204 = vector.broadcast %cst_192 : f32 to vector<32x128xf32>
    %205 = arith.maximumf %203, %204 : vector<32x128xf32>
    %206 = arith.addf %205, %151 : vector<32x128xf32>
    %c0_193 = arith.constant 0 : index
    %c0_194 = arith.constant 0 : index
    %207 = vector.load %arg13[%c0_193, %c0_194] : memref<32x128xf32, #tpu.memory_space<vmem>>, vector<32x128xf32>
    tpu.vector_store %arg13[%c0_193, %c0_194], %206 {strides = array<i32>} : memref<32x128xf32, #tpu.memory_space<vmem>>, vector<32x128xf32>,
    %c0_195 = arith.constant 0 : index
    %c0_196 = arith.constant 0 : index
    %208 = vector.load %arg13[%c0_195, %c0_196] : memref<32x128xf32, #tpu.memory_space<vmem>>, vector<32x128xf32>
    %209 = arith.truncf %208 : vector<32x128xf32> to vector<32x128xbf16>
    %210 = vector.extract_strided_slice %209 {offsets = [0, 0], sizes = [16, 128], strides = [1, 1]} : vector<32x128xbf16> to vector<16x128xbf16>
    %c1_197 = arith.constant 1 : index
    %c0_198 = arith.constant 0 : index
    %211 = vector.load %arg12[%c1_197, %c0_198] : memref<36x128xbf16, #tpu.memory_space<vmem>>, vector<16x128xbf16>
    tpu.vector_store %arg12[%c1_197, %c0_198], %210 {strides = array<i32>} : memref<36x128xbf16, #tpu.memory_space<vmem>>, vector<16x128xbf16>,
    %212 = vector.extract_strided_slice %209 {offsets = [16, 0], sizes = [16, 128], strides = [1, 1]} : vector<32x128xbf16> to vector<16x128xbf16>
    %c19_199 = arith.constant 19 : index
    %c0_200 = arith.constant 0 : index
    %213 = vector.load %arg12[%c19_199, %c0_200] : memref<36x128xbf16, #tpu.memory_space<vmem>>, vector<16x128xbf16>
    tpu.vector_store %arg12[%c19_199, %c0_200], %212 {strides = array<i32>} : memref<36x128xbf16, #tpu.memory_space<vmem>>, vector<16x128xbf16>,
    %c0_201 = arith.constant 0 : index
    %c0_202 = arith.constant 0 : index
    %214 = vector.load %arg9[%c0_201, %c0_202] : memref<1x128xf32, #tpu.memory_space<vmem>>, vector<1x128xf32>
    %c0_203 = arith.constant 0 : index
    %c0_204 = arith.constant 0 : index
    %c0_205 = arith.constant 0 : index
    %215 = vector.load %arg8[%c0_203, %c0_204, %c0_205] : memref<3x128x128xbf16, #tpu.memory_space<vmem>>, vector<1x128x128xbf16>
    %216 = vector.shape_cast %215 : vector<1x128x128xbf16> to vector<128x128xbf16>
    %c0_206 = arith.constant 0 : index
    %c0_207 = arith.constant 0 : index
    %217 = vector.load %arg12[%c0_206, %c0_207] : memref<36x128xbf16, #tpu.memory_space<vmem>>, vector<16x128xbf16>
    %cst_208 = arith.constant dense<0.000000e+00> : vector<16x128xf32>
    %218 = tpu.matmul %217, %216, %cst_208 {dimension_numbers = #tpu.dot_dimension_numbers<[1], [0], [0], [1], [0, 0, 1, 1], [], []>} : vector<16x128xbf16>, vector<128x128xbf16>, vector<16x128xf32> -> vector<16x128xf32>
    %c18_209 = arith.constant 18 : index
    %c0_210 = arith.constant 0 : index
    %219 = vector.load %arg12[%c18_209, %c0_210] : memref<36x128xbf16, #tpu.memory_space<vmem>>, vector<16x128xbf16>
    %cst_211 = arith.constant dense<0.000000e+00> : vector<16x128xf32>
    %220 = tpu.matmul %219, %216, %cst_211 {dimension_numbers = #tpu.dot_dimension_numbers<[1], [0], [0], [1], [0, 0, 1, 1], [], []>} : vector<16x128xbf16>, vector<128x128xbf16>, vector<16x128xf32> -> vector<16x128xf32>
    %c1_212 = arith.constant 1 : index
    %c0_213 = arith.constant 0 : index
    %c0_214 = arith.constant 0 : index
    %221 = vector.load %arg8[%c1_212, %c0_213, %c0_214] : memref<3x128x128xbf16, #tpu.memory_space<vmem>>, vector<1x128x128xbf16>
    %222 = vector.shape_cast %221 : vector<1x128x128xbf16> to vector<128x128xbf16>
    %c1_215 = arith.constant 1 : index
    %c0_216 = arith.constant 0 : index
    %223 = vector.load %arg12[%c1_215, %c0_216] : memref<36x128xbf16, #tpu.memory_space<vmem>>, vector<16x128xbf16>
    %cst_217 = arith.constant dense<0.000000e+00> : vector<16x128xf32>
    %224 = tpu.matmul %223, %222, %cst_217 {dimension_numbers = #tpu.dot_dimension_numbers<[1], [0], [0], [1], [0, 0, 1, 1], [], []>} : vector<16x128xbf16>, vector<128x128xbf16>, vector<16x128xf32> -> vector<16x128xf32>
    %225 = arith.addf %218, %224 : vector<16x128xf32>
    %c19_218 = arith.constant 19 : index
    %c0_219 = arith.constant 0 : index
    %226 = vector.load %arg12[%c19_218, %c0_219] : memref<36x128xbf16, #tpu.memory_space<vmem>>, vector<16x128xbf16>
    %cst_220 = arith.constant dense<0.000000e+00> : vector<16x128xf32>
    %227 = tpu.matmul %226, %222, %cst_220 {dimension_numbers = #tpu.dot_dimension_numbers<[1], [0], [0], [1], [0, 0, 1, 1], [], []>} : vector<16x128xbf16>, vector<128x128xbf16>, vector<16x128xf32> -> vector<16x128xf32>
    %228 = arith.addf %220, %227 : vector<16x128xf32>
    %c2_221 = arith.constant 2 : index
    %c0_222 = arith.constant 0 : index
    %c0_223 = arith.constant 0 : index
    %229 = vector.load %arg8[%c2_221, %c0_222, %c0_223] : memref<3x128x128xbf16, #tpu.memory_space<vmem>>, vector<1x128x128xbf16>
    %230 = vector.shape_cast %229 : vector<1x128x128xbf16> to vector<128x128xbf16>
    %c2_224 = arith.constant 2 : index
    %c0_225 = arith.constant 0 : index
    %231 = vector.load %arg12[%c2_224, %c0_225] : memref<36x128xbf16, #tpu.memory_space<vmem>>, vector<16x128xbf16>
    %cst_226 = arith.constant dense<0.000000e+00> : vector<16x128xf32>
    %232 = tpu.matmul %231, %230, %cst_226 {dimension_numbers = #tpu.dot_dimension_numbers<[1], [0], [0], [1], [0, 0, 1, 1], [], []>} : vector<16x128xbf16>, vector<128x128xbf16>, vector<16x128xf32> -> vector<16x128xf32>
    %233 = arith.addf %225, %232 : vector<16x128xf32>
    %c20_227 = arith.constant 20 : index
    %c0_228 = arith.constant 0 : index
    %234 = vector.load %arg12[%c20_227, %c0_228] : memref<36x128xbf16, #tpu.memory_space<vmem>>, vector<16x128xbf16>
    %cst_229 = arith.constant dense<0.000000e+00> : vector<16x128xf32>
    %235 = tpu.matmul %234, %230, %cst_229 {dimension_numbers = #tpu.dot_dimension_numbers<[1], [0], [0], [1], [0, 0, 1, 1], [], []>} : vector<16x128xbf16>, vector<128x128xbf16>, vector<16x128xf32> -> vector<16x128xf32>
    %236 = arith.addf %228, %235 : vector<16x128xf32>
    %237 = tpu.concatenate %233, %236 in 0 : vector<16x128xf32>, vector<16x128xf32> -> vector<32x128xf32>
    %238 = vector.broadcast %214 : vector<1x128xf32> to vector<32x128xf32>
    %239 = arith.addf %237, %238 : vector<32x128xf32>
    %c0_230 = arith.constant 0 : index
    %c0_231 = arith.constant 0 : index
    %240 = vector.load %arg11[%c0_230, %c0_231] : memref<32x128xf32, #tpu.memory_space<vmem>>, vector<32x128xf32>
    tpu.vector_store %arg11[%c0_230, %c0_231], %239 {strides = array<i32>} : memref<32x128xf32, #tpu.memory_space<vmem>>, vector<32x128xf32>,
    return
  }
  func.func @transform_0(%arg0: i32) -> (i32, i32) {
    %c0_i32 = arith.constant 0 : i32
    %c0_i32_0 = arith.constant 0 : i32
    %c0_i32_1 = arith.constant 0 : i32
    return %c0_i32, %c0_i32_0 : i32, i32
  }
  func.func @transform_1(%arg0: i32) -> (i32, i32, i32) {
    %c0_i32 = arith.constant 0 : i32
    %c0_i32_0 = arith.constant 0 : i32
    %c0_i32_1 = arith.constant 0 : i32
    %c0_i32_2 = arith.constant 0 : i32
    return %c0_i32, %c0_i32_0, %c0_i32_1 : i32, i32, i32
  }
  func.func @transform_2(%arg0: i32) -> (i32, i32) {
    %c0_i32 = arith.constant 0 : i32
    %c0_i32_0 = arith.constant 0 : i32
    %c0_i32_1 = arith.constant 0 : i32
    return %c0_i32, %c0_i32_0 : i32, i32
  }
  func.func @transform_3(%arg0: i32) -> (i32, i32, i32, i32) {
    %c0_i32 = arith.constant 0 : i32
    %c0_i32_0 = arith.constant 0 : i32
    %c0_i32_1 = arith.constant 0 : i32
    %c0_i32_2 = arith.constant 0 : i32
    %c0_i32_3 = arith.constant 0 : i32
    return %c0_i32, %c0_i32_0, %c0_i32_1, %c0_i32_2 : i32, i32, i32, i32
  }
  func.func @transform_4(%arg0: i32) -> (i32, i32, i32) {
    %c0_i32 = arith.constant 0 : i32
    %c0_i32_0 = arith.constant 0 : i32
    %c0_i32_1 = arith.constant 0 : i32
    %c0_i32_2 = arith.constant 0 : i32
    return %c0_i32, %c0_i32_0, %c0_i32_1 : i32, i32, i32
  }
  func.func @transform_5(%arg0: i32) -> (i32, i32, i32) {
    %c0_i32 = arith.constant 0 : i32
    %c0_i32_0 = arith.constant 0 : i32
    %c0_i32_1 = arith.constant 0 : i32
    %c0_i32_2 = arith.constant 0 : i32
    return %c0_i32, %c0_i32_0, %c0_i32_1 : i32, i32, i32
  }
  func.func @transform_6(%arg0: i32) -> (i32, i32, i32) {
    %c0_i32 = arith.constant 0 : i32
    %c0_i32_0 = arith.constant 0 : i32
    %c0_i32_1 = arith.constant 0 : i32
    %c0_i32_2 = arith.constant 0 : i32
    return %c0_i32, %c0_i32_0, %c0_i32_1 : i32, i32, i32
  }
  func.func @transform_7(%arg0: i32) -> (i32, i32, i32) {
    %c0_i32 = arith.constant 0 : i32
    %c0_i32_0 = arith.constant 0 : i32
    %c0_i32_1 = arith.constant 0 : i32
    %c0_i32_2 = arith.constant 0 : i32
    return %c0_i32, %c0_i32_0, %c0_i32_1 : i32, i32, i32
  }
  func.func @transform_8(%arg0: i32) -> (i32, i32) {
    %c0_i32 = arith.constant 0 : i32
    %c0_i32_0 = arith.constant 0 : i32
    %c0_i32_1 = arith.constant 0 : i32
    return %c0_i32, %c0_i32_0 : i32, i32
  }
  func.func @transform_9(%arg0: i32) -> (i32, i32) {
    %c0_i32 = arith.constant 0 : i32
    %c0_i32_0 = arith.constant 0 : i32
    %c0_i32_1 = arith.constant 0 : i32
    return %c0_i32, %c0_i32_0 : i32, i32
  }
  func.func @transform_10(%arg0: i32) -> (i32, i32) {
    %c0_i32 = arith.constant 0 : i32
    %c0_i32_0 = arith.constant 0 : i32
    %c0_i32_1 = arith.constant 0 : i32
    return %c0_i32, %c0_i32_0 : i32, i32
  }
}

</mosaic_0001>

<bundles_post_ra>
// kernel: tpu_custom_call.1
= control target key start
LH: loop header
LB: loop body
LE: loop exit
PB: predicated region body
PF: predicated region fallthrough
CT: control target
= control target key end

     0   :  { %15 = vsyncpa [#allocation5], 0  ;;  %s4219_s0 = inlined_call_operand.hbm [shape: f32[32,128], index: 0, kind: input, shape index: {}]   ;;  %s4220_s1 = inlined_call_operand.hbm [shape: bf16[3,128,128], index: 1, kind: input, shape index: {}]   ;;  %s4221_s2 = inlined_call_operand.hbm [shape: f32[1,128], index: 2, kind: input, shape index: {}]   ;;  %s4222_s3 = inlined_call_operand.hbm [shape: bf16[3,3,128,128], index: 3, kind: input, shape index: {}]   ;;  %s4223_s4 = inlined_call_operand.vmem [shape: f32[3,1,128], index: 4, kind: input, shape index: {}]   ;;  %s4224_s5 = inlined_call_operand.hbm [shape: f32[3,1,128], index: 5, kind: input, shape index: {}]   ;;  %s4225_s6 = inlined_call_operand.hbm [shape: f32[3,1,128], index: 6, kind: input, shape index: {}]   ;;  %s4226_s7 = inlined_call_operand.hbm [shape: bf16[3,128,128], index: 7, kind: input, shape index: {}]   ;;  %s4227_s8 = inlined_call_operand.vmem [shape: f32[1,128], index: 8, kind: input, shape index: {}]   ;;  %s4228_s9 = inlined_call_operand.hbm [shape: f32[128,128], index: 9, kind: input, shape index: {}]   ;;  %s4229_s10 = inlined_call_operand.hbm [shape: f32[32,128], index: 10, kind: output, shape index: {}]  }
   0x1   :  { %16 = vsyncpa [#allocation8], 0 }
   0x2   :  { %17 = vsyncpa [#allocation11], 0 }
   0x3   :  { %18 = vsyncpa [#allocation14], 0 }
   0x4   :  { %19 = vsyncpa [#allocation17], 0  ;;  %s38_s15 = sshll.u32 %s4220_s1, 4  ;;  %s39_s15 = int_to_ptr.hbm [resolvable:$true] %s38_s15 }
   0x5   :  { %20 = vsyncpa [#allocation6], 0  ;;  %s3721_s16 = smov [#allocation7]   ;;  %s62_s20 = sshll.u32 %s4222_s3, 4  ;;  %s63_s20 = int_to_ptr.hbm [resolvable:$true] %s62_s20 }
   0x6   :  { %s40_s17 = sshll.u32 %s3721_s16, 4  ;;  %s3722_s21 = smov 64   ;;  %s41_s17 = int_to_ptr.vmem [resolvable:$true] %s40_s17 }
   0x7   :  { %s3723_s22 = smov 4   ;;  %s3724_s23 = smov [#allocation10]  }
   0x8   :  { %46 = dma.hbm_to_vmem [thread:$0]  %s39_s15, 3072, %s41_s17, [#allocation8], %s3722_s21, %s3722_s21, %s3723_s22  }
   0x9   :  { %s64_s24 = sshll.u32 %s3724_s23, 4  ;;  %s90_s26 = sshll.u32 %s4225_s6, 4  ;;  %s65_s24 = int_to_ptr.vmem [resolvable:$true] %s64_s24  ;;  %s91_s26 = int_to_ptr.hbm [resolvable:$true] %s90_s26 }
   0xa   :  { %70 = dma.hbm_to_vmem [thread:$0]  %s63_s20, 9216, %s65_s24, [#allocation11], %s3722_s21, %s3722_s21, %s3723_s22  }
   0xb   :  { %s3725_s3 = smov [#allocation13]   ;;  %s25_s30 = sshll.u32 %s4219_s0, 4  ;;  %s26_s30 = int_to_ptr.hbm [resolvable:$true] %s25_s30 }
   0xc   :  { %s92_s27 = sshll.u32 %s3725_s3, 4  ;;  %s3726_s11 = smov 16   ;;  %s93_s27 = int_to_ptr.vmem [resolvable:$true] %s92_s27 }
   0xd   :  { %s3727_s12 = smov 1   ;;  %s3728_s13 = smov [#allocation4]  }
   0xe   :  { %98 = dma.hbm_to_vmem [thread:$0]  %s91_s26, 48, %s93_s27, [#allocation14], %s3726_s11, %s3726_s11, %s3727_s12  }
   0xf   :  { %s27_s14 = sshll.u32 %s3728_s13, 4  ;;  %s3729_s15 = smov 128   ;;  %s28_s14 = int_to_ptr.vmem [resolvable:$true] %s27_s14 }
  0x10   :  { %s3730_s16 = smov 8   ;;  %s52_s18 = sshll.u32 %s4221_s2, 4  ;;  %s53_s18 = int_to_ptr.hbm [resolvable:$true] %s52_s18 }
  0x11   :  { %33 = dma.hbm_to_vmem [thread:$0]  %s26_s30, 512, %s28_s14, [#allocation5], %s3729_s15, %s3729_s15, %s3730_s16  }
  0x12   :  { %s3731_s19 = smov [#allocation9]   ;;  %s77_s24 = sshll.u32 %s4224_s5, 4  ;;  %s78_s24 = int_to_ptr.hbm [resolvable:$true] %s77_s24 }
  0x13   :  { %s54_s0 = sshll.u32 %s3731_s19, 4  ;;  %s3732_s1 = smov [#allocation12]   ;;  %s55_s0 = int_to_ptr.vmem [resolvable:$true] %s54_s0 }
  0x14   :  { %57 = dma.hbm_to_vmem [thread:$0]  %s53_s18, 16, %s55_s0, [#allocation8]  }
  0x15   :  { %s79_s25 = sshll.u32 %s3732_s1, 4  ;;  %s103_s27 = sshll.u32 %s4226_s7, 4  ;;  %s80_s25 = int_to_ptr.vmem [resolvable:$true] %s79_s25  ;;  %s104_s27 = int_to_ptr.hbm [resolvable:$true] %s103_s27 }
  0x16   :  { %85 = dma.hbm_to_vmem [thread:$0]  %s78_s24, 48, %s80_s25, [#allocation11], %s3726_s11, %s3726_s11, %s3727_s12  }
  0x17   :  { %s118_s29 = sshll.u32 %s4228_s9, 4  ;;  %s3733_s30 = smov [#allocation15]   ;;  %s119_s29 = int_to_ptr.hbm [resolvable:$true] %s118_s29 }
  0x18   :  { %s105_s13 = sshll.u32 %s3733_s30, 4  ;;  %s3734_s5 = smov [#allocation16]   ;;  %s106_s13 = int_to_ptr.vmem [resolvable:$true] %s105_s13 }
  0x19   :  { %111 = dma.hbm_to_vmem [thread:$0]  %s104_s27, 3072, %s106_s13, [#allocation14], %s3722_s21, %s3722_s21, %s3723_s22  }
  0x1a   :  { %s120_s14 = sshll.u32 %s3734_s5, 4  ;;  %s121_s14 = int_to_ptr.vmem [resolvable:$true] %s120_s14 }
  0x1b   :  { %126 = dma.hbm_to_vmem [thread:$0]  %s119_s29, 2048, %s121_s14, [#allocation17], %s3729_s15, %s3729_s15, %s3730_s16  }
  0x1c   :  { %3709 = dma.done.wait [#allocation5], 512  }
  0x1d   :  { %3710 = vsyncadd [#allocation5], 4294966784 }
  0x1e   :  { %3711 = dma.done.wait [#allocation8], 3088  }
  0x1f   :  { %3712 = vsyncadd [#allocation8], 4294964208 }
  0x20   :  { %3713 = dma.done.wait [#allocation11], 9264  }
  0x21   :  { %3714 = vsyncadd [#allocation11], 4294958032 }
  0x22   :  { %3715 = dma.done.wait [#allocation14], 3120  }
  0x23   :  { %3716 = vsyncadd [#allocation14], 4294964176 }
  0x24   :  { %3717 = dma.done.wait [#allocation17], 2048  }
  0x25   :  { %3718 = vsyncadd [#allocation17], 4294965248  ;;  %v3735_v0 = vmov 0   ;;  %v3303_v1 = vld [vmem:[#allocation7 + $0x78] sm:$0xff]  ;;  %v3302_v3 = vld [vmem:[#allocation7 + $0x70] sm:$0xff]  ;;  %vm196_vm2 = vcmask 1043456  }
  0x26   :  { %160 = vst [vmem:[#allocation2] sm:$0xf] %v3735_v0  ;;  %v3295_v2 = vld [vmem:[#allocation7 + $0x38] sm:$0xff]  ;;  %355 = vmatpush.bf16.msra.mxu0 %v3303_v1  ;;  %v3294_v4 = vld [vmem:[#allocation7 + $0x30] sm:$0xff]  ;;  %460 = vmatpush.bf16.msra.mxu2 %v3303_v1  ;;  %v3301_v5 = vld [vmem:[#allocation7 + $0x68] sm:$0xff]  ;;  %vm203_vm4 = vcmask 1040384  }
  0x27   :  { %161 = vst [vmem:[#allocation2 + $0x4] sm:$0xf] %v3735_v0  ;;  %418 = vmatpush.bf16.msra.mxu1 %v3295_v2  ;;  %482 = vmatpush.bf16.msra.mxu3 %v3295_v2  ;;  %vm173_vm0 = vsmask.f32 256  ;;  %vm174_vm1 = vsmask.f32 4368 }
  0x28   :  { %162 = vst [vmem:[#allocation2 + $0x8] sm:$0xf] %v3735_v0  ;;  %v3293_v6 = vld [vmem:[#allocation7 + $0x28] sm:$0xff]  ;;  %v165_v7 = vld [vmem:[#allocation4] sm:$0xff]  ;;  %vm197_vm3 = vsmask.f32 7938  ;;  %vm3834_vm9 = vmor %vm173_vm0, %vm174_vm1 }
  0x29   :  { %163 = vst [vmem:[#allocation2 + $0xc] sm:$0xf] %v3735_v0  ;;  %v166_v8 = vld [vmem:[#allocation4 + $0x8] sm:$0xff]  ;;  %v169_v9 = vpack.c.bf16 %v165_v7, %v165_v7  ;;  %vm208_vm5 = vsmask.f32 1280  ;;  %v167_v11 = vld [vmem:[#allocation4 + $0x10] sm:$0xff]  ;;  %vm3840_vm11 = vmand %vm196_vm2, %vm197_vm3 }
  0x2a   :  { %164 = vst [vmem:[#allocation2 + $0x10] sm:$0x3] %v3735_v0  ;;  %356 = vmatpush.bf16.msra.mxu0 %v3302_v3  ;;  %461 = vmatpush.bf16.msra.mxu2 %v3302_v3  ;;  %v170_v10 = vpack.c.bf16 %v166_v8, %v166_v8  ;;  %v168_v12 = vld [vmem:[#allocation4 + $0x18] sm:$0xff]  ;;  %vm209_vm6 = vsmask.f32 5392  ;;  %vm233_vm7 = vcmask 1043457   ;;  %v171_v21 = vpack.c.bf16 %v167_v11, %v167_v11  ;;  %vm3846_vm12 = vmand %vm203_vm4, %vm173_vm0 }
  0x2b   :  { %419 = vmatpush.bf16.msra.mxu1 %v3294_v4  ;;  %483 = vmatpush.bf16.msra.mxu3 %v3294_v4  ;;  %vm240_vm8 = vcmask 1041408   ;;  %v3300_v13 = vld [vmem:[#allocation7 + $0x60] sm:$0xff]  ;;  %v177_v15 = vshrl.u32 %v169_v9, 16  ;;  %v180_v16 = vshll.u32 %v169_v9, 16  ;;  %v172_v22 = vpack.c.bf16 %v168_v12, %v168_v12  ;;  %v3299_v27 = vld [vmem:[#allocation7 + $0x58] sm:$0xff]  ;;  %vm3864_vm14 = vmor %vm208_vm5, %vm209_vm6  ;;  %s3737_s17 = smov [#allocation18]  }
  0x2c   :  { %v3292_v14 = vld [vmem:[#allocation7 + $0x20] sm:$0xff]  ;;  %v185_v17 = vshrl.u32 %v170_v10, 16  ;;  %v188_v18 = vshll.u32 %v170_v10, 16  ;;  %vm234_vm10 = vsmask.f32 7942  ;;  %v3291_v28 = vld [vmem:[#allocation7 + $0x18] sm:$0xff]  ;;  %vm3870_vm15 = vmand %vm240_vm8, %vm208_vm5 }
  0x2d   :  { %v199_v20 = vld [vmem:[#allocation2] sm:$0xf]  ;;  %v179_v23 = vrot.slane %v177_v15, 7  ;;  %v212_v30 = vshrl.u32 %v171_v21, 16  ;;  %v215_v31 = vshll.u32 %v171_v21, 16  ;;  %v221_v32 = vshrl.u32 %v172_v22, 16  ;;  %vm3852_vm13 = vmand %vm233_vm7, %vm234_vm10 }
  0x2e   :  { %357 = vmatpush.bf16.msra.mxu0 %v3301_v5  ;;  %462 = vmatpush.bf16.msra.mxu2 %v3301_v5  ;;  %v187_v24 = vrot.slane %v185_v17, 7  ;;  %v224_v33 = vshll.u32 %v172_v22, 16  ;;  %v3298_v52 = vld [vmem:[#allocation7 + $0x50] sm:$0xff]  ;;  %v3297_v59 = vld [vmem:[#allocation7 + $0x48] sm:$0xff]  ;;  %v3296_v0 = vld [vmem:[#allocation7 + $0x40] sm:$0xff]  ;;  %vm477_vm1 = vcmask 1046528  }
  0x2f   :  { %420 = vmatpush.bf16.msra.mxu1 %v3293_v6  ;;  %484 = vmatpush.bf16.msra.mxu3 %v3293_v6  ;;  %v205_v26 = vld [vmem:[#allocation2 + $0x8] sm:$0x1]  ;;  %v182_v34 = vor.u32 %v180_v16, %v179_v23  ;;  %v183_v35 = vrot.slane %v179_v23, 4  ;;  %v214_v38 = vrot.slane %v212_v30, 6  ;;  %v217_v39 = vrot.slane %v215_v31, 7  ;;  %v3289_v60 = vld [vmem:[#allocation7 + $0x8] sm:$0xff] }
  0x30   :  { %v190_v36 = vor.u32 %v188_v18, %v187_v24  ;;  %v192_v37 = vrot.slane %v187_v24, 4  ;;  %v223_v40 = vrot.slane %v221_v32, 6  ;;  %v226_v41 = vrot.slane %v224_v33, 7  ;;  %v236_v46 = vld [vmem:[#allocation2 + $0x8] sm:$0xe]  ;;  %v3288_v1 = vld [vmem:[#allocation7] sm:$0xff] }
  0x31   :  { %v200_v44 = vsel %vm3840_vm11, %v182_v34, %v199_v20  ;;  %v218_v48 = vor.u32 %v217_v39, %v214_v38  ;;  %v242_v51 = vld [vmem:[#allocation2 + $0x10] sm:$0x3]  ;;  %v3290_v53 = vld [vmem:[#allocation7 + $0x10] sm:$0xff]  ;;  %vm293_vm0 = vsmask.f32 7424  ;;  %v3309_v32 = vld [vmem:[#allocation7 + $0xa8] sm:$0xff] }
  0x32   :  { %358 = vmatpush.bf16.msra.mxu0 %v3300_v13  ;;  %463 = vmatpush.bf16.msra.mxu2 %v3300_v13  ;;  %v191_v43 = vsel %vm3834_vm9, %v183_v35, %v190_v36  ;;  %v206_v45 = vsel %vm3846_vm12, %v192_v37, %v205_v26  ;;  %201 = vst [vmem:[#allocation2] sm:$0xf] %v200_v44  ;;  %v3311_v5 = vld [vmem:[#allocation7 + $0xb8] sm:$0xff]  ;;  %v3310_v17 = vld [vmem:[#allocation7 + $0xb0] sm:$0xff]  ;;  %vm441_vm2 = vsmask.f32 6400 }
  0x33   :  { %421 = vmatpush.bf16.msra.mxu1 %v3292_v14  ;;  %485 = vmatpush.bf16.msra.mxu3 %v3292_v14  ;;  %v227_v49 = vor.u32 %v226_v41, %v223_v40  ;;  %202 = vst [vmem:[#allocation2 + $0x4] sm:$0xf] %v191_v43  ;;  %v219_v54 = vrot.slane %v218_v48, 4  ;;  %v237_v56 = vsel %vm3852_vm13, %v218_v48, %v236_v46  ;;  %v3308_v40 = vld [vmem:[#allocation7 + $0xa0] sm:$0xff]  ;;  %v3307_v43 = vld [vmem:[#allocation7 + $0x98] sm:$0xff]  ;;  %vm589_vm3 = vcmask 1045504  }
  0x34   :  { %207 = vst [vmem:[#allocation2 + $0x8] sm:$0x1] %v206_v45  ;;  %v3306_v45 = vld [vmem:[#allocation7 + $0x90] sm:$0xff]  ;;  %vm1069_vm4 = vcmask 261120   ;;  %s2781_s18 = sshll.u32 %s3737_s17, 4  ;;  %s2783_s0 = sshll.u32 %s4229_s10, 4  ;;  %s2782_s18 = int_to_ptr.vmem [resolvable:$true] %s2781_s18  ;;  %s2784_s0 = int_to_ptr.hbm [resolvable:$true] %s2783_s0 }
  0x35   :  { %v229_v55 = vrot.slane %v227_v49, 4  ;;  %238 = vst [vmem:[#allocation2 + $0x8] sm:$0xe] %v237_v56  ;;  %v228_v57 = vsel %vm3864_vm14, %v219_v54, %v227_v49  ;;  %v3304_v54 = vld [vmem:[#allocation7 + $0x80] sm:$0xff] }
  0x36   :  { %359 = vmatpush.bf16.msra.mxu0 %v3299_v27  ;;  %464 = vmatpush.bf16.msra.mxu2 %v3299_v27  ;;  %239 = vst [vmem:[#allocation2 + $0xc] sm:$0xf] %v228_v57 }
  0x37   :  { %422 = vmatpush.bf16.msra.mxu1 %v3291_v28  ;;  %486 = vmatpush.bf16.msra.mxu3 %v3291_v28  ;;  %v243_v58 = vsel %vm3870_vm15, %v229_v55, %v242_v51  ;;  %v3305_v51 = vld [vmem:[#allocation7 + $0x88] sm:$0xff] }
  0x38   :  { %244 = vst [vmem:[#allocation2 + $0x10] sm:$0x3] %v243_v58 }
  0x39   :  { %v3429_v49 = vld [vmem:[#allocation2] sm:$0xe] }
  0x3a   :  { %360 = vmatpush.bf16.msra.mxu0 %v3298_v52  ;;  %465 = vmatpush.bf16.msra.mxu2 %v3298_v52  ;;  %v3409_v61 = vld [vmem:[#allocation2] sm:$0xff]  }
  0x3b   :  { %423 = vmatpush.bf16.msra.mxu1 %v3290_v53  ;;  %487 = vmatpush.bf16.msra.mxu3 %v3290_v53  ;;  %v284_v62 = vld [vmem:[#allocation2 + $0x8] sm:$0x1]  ;;  %v297_v63 = vshll.u32 %v3409_v61, 16  ;;  %v295_v3 = vshrl.u32 %v3409_v61, 16  ;;  %v3428_v48 = vld [vmem:[#allocation2] sm:$0xf0] }
  0x3c   :  { %v290_v2 = vunpack.c.l.b16 %v284_v62  ;;  %v264_v4 = vld [vmem:[#allocation2 + $0x8] sm:$0xe]  ;;  %v3430_v52 = vor.u32 %v3429_v49, %v3428_v48  ;;  %v3327_v62 = vld [vmem:[#allocation10 + $0x78] sm:$0xff] }
  0x3d   :  { %v299_v6 = vrot.slane %v297_v63, 1  ;;  %v436_v7 = vunpack.c.l.b16 %v264_v4  ;;  %v265_v9 = vld [vmem:[#allocation2 + $0xc] sm:$0xf]  ;;  %v585_v44 = vld [vmem:[#allocation2 + $0x8] sm:$0xc]  ;;  %v3325_v4 = vld [vmem:[#allocation10 + $0x68] sm:$0xff] }
  0x3e   :  { %361 = vmatpush.bf16.msra.mxu0 %v3297_v59  ;;  %466 = vmatpush.bf16.msra.mxu2 %v3297_v59  ;;  %v3880_v8 = vpack.c.b16 %v290_v2, %v290_v2  ;;  %v437_v11 = vunpack.c.l.b16 %v265_v9  ;;  %v587_v46 = vunpack.c.l.b16 %v585_v44  ;;  %v517_v55 = vrot.slane %v3430_v52, 1  ;;  %v3318_v63 = vld [vmem:[#allocation10 + $0x30] sm:$0xff]  ;;  %v3316_v2 = vld [vmem:[#allocation10 + $0x20] sm:$0xff] }
  0x3f   :  { %424 = vmatpush.bf16.msra.mxu1 %v3289_v60  ;;  %488 = vmatpush.bf16.msra.mxu3 %v3289_v60  ;;  %v432_v10 = vld [vmem:[#allocation2 + $0x10] sm:$0x3]  ;;  %v300_v13 = vor.u32 %v299_v6, %v295_v3  ;;  %v3324_v6 = vld [vmem:[#allocation10 + $0x60] sm:$0xff] }
  0x40   :  { %v266_v12 = vld [vmem:[#allocation2 + $0x10] sm:$0x1]  ;;  %v302_v14 = vshll.u32 %v3880_v8, 16  ;;  %v438_v15 = vunpack.c.l.b16 %v432_v10  ;;  %v439_v18 = vpack.c.b16 %v437_v11, %v436_v7  ;;  %v588_v53 = vpack.c.b16 %v437_v11, %v587_v46  ;;  %v3313_v7 = vld [vmem:[#allocation10 + $0x8] sm:$0xff]  ;;  %v3312_v9 = vld [vmem:[#allocation10] sm:$0xff] }
  0x41   :  { %v475_v16 = vunpack.c.l.b16 %v266_v12  ;;  %v518_v56 = vrot.slane %v3880_v8, 1  ;;  %v3315_v3 = vld [vmem:[#allocation10 + $0x18] sm:$0xff]  ;;  %v3322_v12 = vld [vmem:[#allocation10 + $0x50] sm:$0xff] }
  0x42   :  { %362 = vmatpush.bf16.msra.mxu0 %v3296_v0  ;;  %v304_v20 = vrot.slane %v302_v14, 1  ;;  %467 = vmatpush.bf16.msra.mxu2 %v3296_v0  ;;  %v440_v21 = vpack.c.b16 %v438_v15, %v438_v15  ;;  %v443_v23 = vshrl.u32 %v439_v18, 16  ;;  %v446_v24 = vshll.u32 %v439_v18, 16  ;;  %v3326_v0 = vld [vmem:[#allocation10 + $0x70] sm:$0xff]  ;;  %v3323_v8 = vld [vmem:[#allocation10 + $0x58] sm:$0xff]  ;;  %v3321_v14 = vld [vmem:[#allocation10 + $0x48] sm:$0xff] }
  0x43   :  { %425 = vmatpush.bf16.msra.mxu1 %v3288_v1  ;;  %489 = vmatpush.bf16.msra.mxu3 %v3288_v1  ;;  %v476_v22 = vpack.c.b16 %v475_v16, %v475_v16  ;;  %v478_v26 = vrot.slane %v439_v18, 1  ;;  %v590_v57 = vrot.slane %v588_v53, 2  ;;  %v519_v59 = vsel %vm477_vm1, %v517_v55, %v518_v56  ;;  %v3317_v1 = vld [vmem:[#allocation10 + $0x28] sm:$0xff]  ;;  %v3334_v15 = vld [vmem:[#allocation10 + $0xb0] sm:$0xff]  ;;  %v3320_v16 = vld [vmem:[#allocation10 + $0x40] sm:$0xff] }
  0x44   :  { %v305_v27 = vsel %vm293_vm0, %v300_v13, %v304_v20  ;;  %v451_v28 = vshrl.u32 %v440_v21, 16  ;;  %v454_v30 = vshll.u32 %v440_v21, 16  ;;  %v445_v33 = vrot.slane %v443_v23, 1  ;;  %v3335_v13 = vld [vmem:[#allocation10 + $0xb8] sm:$0xff]  ;;  %v3332_v23 = vld [vmem:[#allocation10 + $0xa0] sm:$0xff] }
  0x45   :  { %v479_v31 = vrot.slane %v476_v22, 1  ;;  %v448_v34 = vrot.slane %v446_v24, 2  ;;  %363 = vmatmul.bf16.vlgmr.msra.gmra.mxu0 %v305_v27  ;;  %v591_v58 = vrot.slane %v440_v21, 2 }
  0x46   :  { %569 = vmatpush.bf16.msrb.mxu0 %v3311_v5  ;;  %426 = vmatmul.bf16.vlgmr.msra.gmra.mxu1 %v3409_v61  ;;  %v453_v35 = vrot.slane %v451_v28, 1  ;;  %v456_v36 = vrot.slane %v454_v30, 2  ;;  %v3319_v61 = vld [vmem:[#allocation10 + $0x38] sm:$0xff] }
  0x47   :  { %594 = vmatpush.bf16.msrb.mxu1 %v3311_v5  ;;  %v480_v37 = vsel %vm477_vm1, %v478_v26, %v479_v31  ;;  %v449_v38 = vor.u32 %v448_v34, %v445_v33  ;;  %v592_v60 = vsel %vm589_vm3, %v590_v57, %v591_v58  ;;  %873 = vmatpush.bf16.msrb.mxu3 %v3319_v61  ;;  %v3314_v5 = vld [vmem:[#allocation10 + $0x10] sm:$0xff]  ;;  %v3331_v26 = vld [vmem:[#allocation10 + $0x98] sm:$0xff]  ;;  %v665_v57 = vld [vmem:[#allocation2] sm:$0xf] }
  0x48   :  { %490 = vmatmul.bf16.vlgmr.msra.gmra.mxu3 %v480_v37  ;;  %v457_v39 = vor.u32 %v456_v36, %v453_v35  ;;  %810 = vmatpush.bf16.msrb.mxu2 %v3327_v62  ;;  %v3460_v28 = vld [vmem:[#allocation9] ss:$0 sm:$0xff]  ;;  %v694_v58 = vld [vmem:[#allocation2 + $0x8] sm:$0xe] }
  0x4a   :  { %570 = vmatpush.bf16.msrb.mxu0 %v3310_v17  ;;  %v458_v41 = vsel %vm441_vm2, %v449_v38, %v457_v39 }
  0x4b   :  { %595 = vmatpush.bf16.msrb.mxu1 %v3310_v17  ;;  %468 = vmatmul.bf16.vlgmr.msra.gmra.mxu2 %v458_v41  ;;  %v3333_v17 = vld [vmem:[#allocation10 + $0xa8] sm:$0xff] }
  0x4c   :  { %874 = vmatpush.bf16.msrb.mxu3 %v3318_v63  ;;  %811 = vmatpush.bf16.msrb.mxu2 %v3326_v0 }
  0x4e   :  { %571 = vmatpush.bf16.msrb.mxu0 %v3309_v32 }
  0x4f   :  { %596 = vmatpush.bf16.msrb.mxu1 %v3309_v32  ;;  %v3330_v32 = vld [vmem:[#allocation10 + $0x90] sm:$0xff] }
  0x50   :  { %875 = vmatpush.bf16.msrb.mxu3 %v3317_v1  ;;  %812 = vmatpush.bf16.msrb.mxu2 %v3325_v4 }
  0x52   :  { %572 = vmatpush.bf16.msrb.mxu0 %v3308_v40 }
  0x53   :  { %597 = vmatpush.bf16.msrb.mxu1 %v3308_v40 }
  0x54   :  { %876 = vmatpush.bf16.msrb.mxu3 %v3316_v2  ;;  %813 = vmatpush.bf16.msrb.mxu2 %v3324_v6 }
  0x56   :  { %573 = vmatpush.bf16.msrb.mxu0 %v3307_v43 }
  0x57   :  { %598 = vmatpush.bf16.msrb.mxu1 %v3307_v43  ;;  %v3329_v43 = vld [vmem:[#allocation10 + $0x88] sm:$0xff] }
  0x58   :  { %877 = vmatpush.bf16.msrb.mxu3 %v3315_v3  ;;  %814 = vmatpush.bf16.msrb.mxu2 %v3323_v8 }
  0x5a   :  { %574 = vmatpush.bf16.msrb.mxu0 %v3306_v45 }
  0x5b   :  { %599 = vmatpush.bf16.msrb.mxu1 %v3306_v45 }
  0x5c   :  { %878 = vmatpush.bf16.msrb.mxu3 %v3314_v5  ;;  %815 = vmatpush.bf16.msrb.mxu2 %v3322_v12 }
  0x5e   :  { %575 = vmatpush.bf16.msrb.mxu0 %v3305_v51 }
  0x5f   :  { %600 = vmatpush.bf16.msrb.mxu1 %v3305_v51 }
  0x60   :  { %879 = vmatpush.bf16.msrb.mxu3 %v3313_v7  ;;  %816 = vmatpush.bf16.msrb.mxu2 %v3321_v14 }
  0x62   :  { %576 = vmatpush.bf16.msrb.mxu0 %v3304_v54 }
  0x63   :  { %601 = vmatpush.bf16.msrb.mxu1 %v3304_v54 }
  0x64   :  { %880 = vmatpush.bf16.msrb.mxu3 %v3312_v9  ;;  %817 = vmatpush.bf16.msrb.mxu2 %v3320_v16 }
  0x65   :  { %577 = vmatmul.bf16.vlgmr.msrb.gmra.mxu0 %v519_v59 }
  0x66   :  { %602 = vmatmul.bf16.vlgmr.msrb.gmra.mxu1 %v592_v60  ;;  %914 = vmatpush.bf16.msra.mxu0 %v3327_v62  ;;  %v3328_v60 = vld [vmem:[#allocation10 + $0x80] sm:$0xff] }
  0x67   :  { %935 = vmatpush.bf16.msra.mxu1 %v3319_v61 }
  0x68   :  { %1046 = vmatpush.bf16.msra.mxu3 %v3335_v13  ;;  %1022 = vmatpush.bf16.msra.mxu2 %v3335_v13 }
  0x6a   :  { %915 = vmatpush.bf16.msra.mxu0 %v3326_v0 }
  0x6b   :  { %936 = vmatpush.bf16.msra.mxu1 %v3318_v63 }
  0x6c   :  { %1047 = vmatpush.bf16.msra.mxu3 %v3334_v15  ;;  %1023 = vmatpush.bf16.msra.mxu2 %v3334_v15 }
  0x6e   :  { %916 = vmatpush.bf16.msra.mxu0 %v3325_v4 }
  0x6f   :  { %937 = vmatpush.bf16.msra.mxu1 %v3317_v1 }
  0x70   :  { %1048 = vmatpush.bf16.msra.mxu3 %v3333_v17  ;;  %1024 = vmatpush.bf16.msra.mxu2 %v3333_v17 }
  0x72   :  { %917 = vmatpush.bf16.msra.mxu0 %v3324_v6 }
  0x73   :  { %938 = vmatpush.bf16.msra.mxu1 %v3316_v2 }
  0x74   :  { %1049 = vmatpush.bf16.msra.mxu3 %v3332_v23  ;;  %1025 = vmatpush.bf16.msra.mxu2 %v3332_v23 }
  0x76   :  { %918 = vmatpush.bf16.msra.mxu0 %v3323_v8 }
  0x77   :  { %939 = vmatpush.bf16.msra.mxu1 %v3315_v3 }
  0x78   :  { %1050 = vmatpush.bf16.msra.mxu3 %v3331_v26  ;;  %1026 = vmatpush.bf16.msra.mxu2 %v3331_v26 }
  0x7a   :  { %919 = vmatpush.bf16.msra.mxu0 %v3322_v12 }
  0x7b   :  { %940 = vmatpush.bf16.msra.mxu1 %v3314_v5 }
  0x7c   :  { %1051 = vmatpush.bf16.msra.mxu3 %v3330_v32  ;;  %1027 = vmatpush.bf16.msra.mxu2 %v3330_v32 }
  0x7e   :  { %920 = vmatpush.bf16.msra.mxu0 %v3321_v14 }
  0x7f   :  { %941 = vmatpush.bf16.msra.mxu1 %v3313_v7 }
  0x80   :  { %1052 = vmatpush.bf16.msra.mxu3 %v3329_v43  ;;  %1028 = vmatpush.bf16.msra.mxu2 %v3329_v43 }
  0x82   :  { %921 = vmatpush.bf16.msra.mxu0 %v3320_v16 }
  0x83   :  { %942 = vmatpush.bf16.msra.mxu1 %v3312_v9 }
  0x84   :  { %1053 = vmatpush.bf16.msra.mxu3 %v3328_v60  ;;  %1029 = vmatpush.bf16.msra.mxu2 %v3328_v60 }
  0xc2   :  { %v364_v10 = vpop.f32.mrf.mxu0 }
  0xc3   :  { %v427_v11 = vpop.f32.mrf.mxu1 }
  0xc4   :  { %v428_v27 = vadd.f32 %v427_v11, %v364_v10  ;;  %v669_v11 = vld [vmem:[#allocation2 + $0x8] sm:$0x1] }
  0xca   :  { %v366_v18 = vpop.f32.mrf.mxu0 }
  0xcb   :  { %v429_v20 = vpop.f32.mrf.mxu1  ;;  %v491_v22 = vpop.f32.mrf.mxu3 }
  0xcc   :  { %v430_v44 = vadd.f32 %v429_v20, %v366_v18 }
  0xce   :  { %v469_v21 = vpop.f32.mrf.mxu2 }
  0xcf   :  { %v492_v24 = vadd.f32 %v491_v22, %v469_v21  ;;  %v698_v21 = vld [vmem:[#allocation2 + $0x10] sm:$0x3] }
  0xd3   :  { %v493_v38 = vpop.f32.mrf.mxu3 }
  0xd6   :  { %v471_v37 = vpop.f32.mrf.mxu2 }
  0xd7   :  { %v494_v41 = vadd.f32 %v493_v38, %v471_v37 }
  0xe2   :  { %v578_v30 = vpop.f32.mrf.mxu0 }
  0xe3   :  { %v603_v31 = vpop.f32.mrf.mxu1  ;;  %v583_v33 = vadd.f32 %v578_v30, %v428_v27 }
  0xe4   :  { %v608_v34 = vadd.f32 %v603_v31, %v492_v24 }
  0xe5   :  { %v3889_v35 = vadd.f32 %v3460_v28, %v583_v33 }
  0xe6   :  { %v3891_v36 = vadd.f32 %v3460_v28, %v608_v34 }
  0xe7   :  { %v641_v39 = vpack.c.bf16 %v3889_v35, %v3889_v35 }
  0xe8   :  { %v643_v40 = vpack.c.bf16 %v3891_v36, %v3891_v36 }
  0xe9   :  { %v646_v45 = vshrl.u32 %v641_v39, 16  ;;  %v649_v49 = vshll.u32 %v641_v39, 16 }
  0xea   :  { %v673_v46 = vshrl.u32 %v643_v40, 16  ;;  %v676_v48 = vshll.u32 %v643_v40, 16  ;;  %v580_v51 = vpop.f32.mrf.mxu0 }
  0xeb   :  { %v605_v52 = vpop.f32.mrf.mxu1  ;;  %v648_v53 = vrot.slane %v646_v45, 7  ;;  %v584_v56 = vadd.f32 %v580_v51, %v430_v44 }
  0xec   :  { %v675_v54 = vrot.slane %v673_v46, 6  ;;  %v678_v55 = vrot.slane %v676_v48, 7  ;;  %v609_v59 = vadd.f32 %v605_v52, %v494_v41 }
  0xed   :  { %v651_v61 = vor.u32 %v649_v49, %v648_v53  ;;  %v3897_v63 = vadd.f32 %v3460_v28, %v584_v56  ;;  %v652_v14 = vrot.slane %v648_v53, 4 }
  0xee   :  { %v679_v62 = vor.u32 %v678_v55, %v675_v54  ;;  %v3899_v0 = vadd.f32 %v3460_v28, %v609_v59 }
  0xef   :  { %v666_v1 = vsel %vm3840_vm11, %v651_v61, %v665_v57  ;;  %v642_v3 = vpack.c.bf16 %v3897_v63, %v3897_v63 }
  0xf0   :  { %v695_v2 = vsel %vm3852_vm13, %v679_v62, %v694_v58  ;;  %667 = vst [vmem:[#allocation2] sm:$0xf] %v666_v1  ;;  %v644_v4 = vpack.c.bf16 %v3899_v0, %v3899_v0  ;;  %v680_v10 = vrot.slane %v679_v62, 4 }
  0xf1   :  { %696 = vst [vmem:[#allocation2 + $0x8] sm:$0xe] %v695_v2  ;;  %v654_v5 = vshrl.u32 %v642_v3, 16  ;;  %v657_v9 = vshll.u32 %v642_v3, 16 }
  0xf2   :  { %v682_v6 = vshrl.u32 %v644_v4, 16  ;;  %v685_v7 = vshll.u32 %v644_v4, 16 }
  0xf3   :  { %v656_v8 = vrot.slane %v654_v5, 7 }
  0xf4   :  { %v684_v12 = vrot.slane %v682_v6, 6  ;;  %v687_v13 = vrot.slane %v685_v7, 7 }
  0xf5   :  { %v659_v15 = vor.u32 %v657_v9, %v656_v8  ;;  %v661_v16 = vrot.slane %v656_v8, 4 }
  0xf6   :  { %v688_v17 = vor.u32 %v687_v13, %v684_v12 }
  0xf7   :  { %v660_v18 = vsel %vm3834_vm9, %v652_v14, %v659_v15  ;;  %v670_v20 = vsel %vm3846_vm12, %v661_v16, %v669_v11  ;;  %v3432_v13 = vld [vmem:[#allocation2] sm:$0xe] }
  0xf8   :  { %668 = vst [vmem:[#allocation2 + $0x4] sm:$0xf] %v660_v18  ;;  %v689_v22 = vsel %vm3864_vm14, %v680_v10, %v688_v17  ;;  %v690_v23 = vrot.slane %v688_v17, 4  ;;  %v720_v26 = vld [vmem:[#allocation2 + $0x8] sm:$0xe] }
  0xf9   :  { %671 = vst [vmem:[#allocation2 + $0x8] sm:$0x1] %v670_v20  ;;  %v1038_v28 = vld [vmem:[#allocation2 + $0x8] sm:$0xc]  ;;  %v891_v32 = vunpack.c.l.b16 %v720_v26 }
  0xfa   :  { %697 = vst [vmem:[#allocation2 + $0xc] sm:$0xf] %v689_v22  ;;  %v699_v24 = vsel %vm3870_vm15, %v690_v23, %v698_v21  ;;  %v1040_v41 = vunpack.c.l.b16 %v1038_v28  ;;  %v3922_v23 = vld [vmem:[#allocation16 + $0x78] sm:$0xff]  ;;  %v3932_v28 = vld [vmem:[#allocation16 + $0x60] sm:$0xff] }
  0xfb   :  { %700 = vst [vmem:[#allocation2 + $0x10] sm:$0x3] %v699_v24  ;;  %v3924_v24 = vld [vmem:[#allocation16 + $0x70] sm:$0xff]  ;;  %1093 = vmatpush.msrb.mxu1 %v3922_v23 }
  0xfd   :  { %1094 = vmatpush.msrb.mxu1 %v3924_v24 }
  0xff   :  { %v3413_v27 = vld [vmem:[#allocation2] sm:$0xff]  }
 0x100   :  { %881 = vmatmul.bf16.vlgmr.msrb.gmra.mxu3 %v3413_v27  ;;  %v740_v30 = vld [vmem:[#allocation2 + $0x8] sm:$0x1]  ;;  %v752_v31 = vshll.u32 %v3413_v27, 16  ;;  %v750_v44 = vshrl.u32 %v3413_v27, 16  ;;  %v3431_v12 = vld [vmem:[#allocation2] sm:$0xf0] }
 0x101   :  { %v746_v33 = vunpack.c.l.b16 %v740_v30  ;;  %v721_v34 = vld [vmem:[#allocation2 + $0xc] sm:$0xf]  ;;  %v3433_v14 = vor.u32 %v3432_v13, %v3431_v12  ;;  %1142 = vmatpush.msrb.mxu3 %v3922_v23 }
 0x102   :  { %v754_v37 = vrot.slane %v752_v31, 1  ;;  %v722_v38 = vld [vmem:[#allocation2 + $0x10] sm:$0x1]  ;;  %v892_v39 = vunpack.c.l.b16 %v721_v34  ;;  %v3928_v27 = vld [vmem:[#allocation16 + $0x68] sm:$0xff]  ;;  %v3936_v31 = vld [vmem:[#allocation16 + $0x58] sm:$0xff] }
 0x103   :  { %v887_v40 = vld [vmem:[#allocation2 + $0x10] sm:$0x3]  ;;  %v748_v43 = vpack.c.b16 %v746_v33, %v746_v33  ;;  %v929_v45 = vunpack.c.l.b16 %v722_v38  ;;  %v970_v16 = vrot.slane %v3433_v14, 1  ;;  %1143 = vmatpush.msrb.mxu3 %v3924_v24  ;;  %1095 = vmatpush.msrb.mxu1 %v3928_v27 }
 0x104   :  { %v893_v46 = vunpack.c.l.b16 %v887_v40  ;;  %v894_v48 = vpack.c.b16 %v892_v39, %v891_v32  ;;  %v755_v49 = vor.u32 %v754_v37, %v750_v44  ;;  %v1041_v57 = vpack.c.b16 %v892_v39, %v1040_v41  ;;  %v3940_v33 = vld [vmem:[#allocation16 + $0x50] sm:$0xff]  ;;  %v3944_v37 = vld [vmem:[#allocation16 + $0x48] sm:$0xff]  ;;  %v3948_v39 = vld [vmem:[#allocation16 + $0x40] sm:$0xff] }
 0x105   :  { %v757_v51 = vshll.u32 %v748_v43, 16  ;;  %v930_v52 = vpack.c.b16 %v929_v45, %v929_v45  ;;  %v971_v15 = vrot.slane %v748_v43, 1  ;;  %1144 = vmatpush.msrb.mxu3 %v3928_v27  ;;  %1096 = vmatpush.msrb.mxu1 %v3932_v28  ;;  %v3952_v44 = vld [vmem:[#allocation16 + $0x38] sm:$0xff] }
 0x106   :  { %v895_v53 = vpack.c.b16 %v893_v46, %v893_v46  ;;  %v931_v54 = vrot.slane %v894_v48, 1  ;;  %v897_v55 = vshrl.u32 %v894_v48, 16  ;;  %v900_v56 = vshll.u32 %v894_v48, 16  ;;  %v3461_v46 = vld [vmem:[%s4223_s4] ss:$0 sm:$0xff] }
 0x107   :  { %v759_v58 = vrot.slane %v757_v51, 1  ;;  %v932_v59 = vrot.slane %v930_v52, 1  ;;  %v1042_v8 = vrot.slane %v1041_v57, 2  ;;  %v972_v17 = vsel %vm477_vm1, %v970_v16, %v971_v15  ;;  %1145 = vmatpush.msrb.mxu3 %v3932_v28  ;;  %1097 = vmatpush.msrb.mxu1 %v3936_v31  ;;  %v3959_v51 = vld [vmem:[#allocation16 + $0x30] sm:$0xff] }
 0x108   :  { %v905_v60 = vshrl.u32 %v895_v53, 16  ;;  %v908_v61 = vshll.u32 %v895_v53, 16  ;;  %v899_v62 = vrot.slane %v897_v55, 1  ;;  %v902_v1 = vrot.slane %v900_v56, 2  ;;  %v3966_v55 = vld [vmem:[#allocation16 + $0x20] sm:$0xff]  ;;  %v3970_v56 = vld [vmem:[#allocation16 + $0x18] sm:$0xff] }
 0x109   :  { %v760_v2 = vsel %vm293_vm0, %v755_v49, %v759_v58  ;;  %v933_v3 = vsel %vm477_vm1, %v931_v54, %v932_v59  ;;  %v1043_v9 = vrot.slane %v895_v53, 2  ;;  %1146 = vmatpush.msrb.mxu3 %v3936_v31  ;;  %1098 = vmatpush.msrb.mxu1 %v3940_v33  ;;  %v3963_v53 = vld [vmem:[#allocation16 + $0x28] sm:$0xff] }
 0x10a   :  { %v907_v4 = vrot.slane %v905_v60, 1  ;;  %v910_v5 = vrot.slane %v908_v61, 2  ;;  %818 = vmatmul.bf16.vlgmr.msrb.gmra.mxu2 %v760_v2  ;;  %943 = vmatmul.bf16.vlgmr.msra.gmra.mxu1 %v933_v3  ;;  %v903_v6 = vor.u32 %v902_v1, %v899_v62  ;;  %v3974_v60 = vld [vmem:[#allocation16 + $0x10] sm:$0xff]  ;;  %v3978_v1 = vld [vmem:[#allocation16 + $0x8] sm:$0xff] }
 0x10b   :  { %v1044_v11 = vsel %vm589_vm3, %v1042_v8, %v1043_v9  ;;  %1147 = vmatpush.msrb.mxu3 %v3940_v33  ;;  %1099 = vmatpush.msrb.mxu1 %v3944_v37 }
 0x10c   :  { %v911_v7 = vor.u32 %v910_v5, %v907_v4  ;;  %v3736_v4 = vmov 1.0   ;;  %v3987_v5 = vld [vmem:[#allocation16] sm:$0xff] }
 0x10d   :  { %1148 = vmatpush.msrb.mxu3 %v3944_v37  ;;  %1100 = vmatpush.msrb.mxu1 %v3948_v39 }
 0x10e   :  { %v912_v10 = vsel %vm441_vm2, %v903_v6, %v911_v7 }
 0x10f   :  { %922 = vmatmul.bf16.vlgmr.msra.gmra.mxu0 %v912_v10  ;;  %1149 = vmatpush.msrb.mxu3 %v3948_v39 }
 0x110   :  { %1054 = vmatmul.bf16.vlgmr.msra.gmra.mxu3 %v1044_v11  ;;  %1101 = vmatpush.msrb.mxu1 %v3952_v44 }
 0x111   :  { %1150 = vmatpush.msrb.mxu3 %v3952_v44 }
 0x112   :  { %1102 = vmatpush.msrb.mxu1 %v3959_v51 }
 0x113   :  { %1151 = vmatpush.msrb.mxu3 %v3959_v51 }
 0x114   :  { %1103 = vmatpush.msrb.mxu1 %v3963_v53 }
 0x115   :  { %1152 = vmatpush.msrb.mxu3 %v3963_v53 }
 0x116   :  { %1104 = vmatpush.msrb.mxu1 %v3966_v55 }
 0x117   :  { %1153 = vmatpush.msrb.mxu3 %v3966_v55 }
 0x118   :  { %1105 = vmatpush.msrb.mxu1 %v3970_v56 }
 0x119   :  { %1154 = vmatpush.msrb.mxu3 %v3970_v56 }
 0x11a   :  { %1030 = vmatmul.bf16.vlgmr.msra.gmra.mxu2 %v972_v17  ;;  %1106 = vmatpush.msrb.mxu1 %v3974_v60 }
 0x11b   :  { %1155 = vmatpush.msrb.mxu3 %v3974_v60 }
 0x11c   :  { %1107 = vmatpush.msrb.mxu1 %v3978_v1 }
 0x11d   :  { %1156 = vmatpush.msrb.mxu3 %v3978_v1 }
 0x11e   :  { %1108 = vmatpush.msrb.mxu1 %v3987_v5 }
 0x11f   :  { %1157 = vmatpush.msrb.mxu3 %v3987_v5 }
 0x183   :  { %v882_v18 = vpop.f32.mrf.mxu3 }
 0x187   :  { %v944_v26 = vpop.f32.mrf.mxu1 }
 0x18b   :  { %v884_v20 = vpop.f32.mrf.mxu3 }
 0x18c   :  { %v923_v21 = vpop.f32.mrf.mxu0 }
 0x18d   :  { %v819_v22 = vpop.f32.mrf.mxu2  ;;  %v945_v40 = vadd.f32 %v944_v26, %v923_v21  ;;  %v3341_v21 = vld [vmem:[#allocation10 + $0xe8] sm:$0xff]  ;;  %v3340_v26 = vld [vmem:[#allocation10 + $0xe0] sm:$0xff] }
 0x18e   :  { %v883_v57 = vadd.f32 %v882_v18, %v819_v22  ;;  %v3343_v18 = vld [vmem:[#allocation10 + $0xf8] sm:$0xff] }
 0x18f   :  { %v946_v38 = vpop.f32.mrf.mxu1  ;;  %1505 = vmatpush.bf16.msra.mxu3 %v3343_v18  ;;  %v3351_v22 = vld [vmem:[#allocation10 + $0x138] sm:$0xff] }
 0x190   :  { %1484 = vmatpush.bf16.msra.mxu1 %v3351_v22 }
 0x193   :  { %v1055_v30 = vpop.f32.mrf.mxu3 }
 0x194   :  { %v925_v34 = vpop.f32.mrf.mxu0  ;;  %v1060_v45 = vadd.f32 %v1055_v30, %v945_v40  ;;  %v3350_v30 = vld [vmem:[#allocation10 + $0x130] sm:$0xff]  ;;  %v3348_v40 = vld [vmem:[#allocation10 + $0x120] sm:$0xff] }
 0x195   :  { %v821_v32 = vpop.f32.mrf.mxu2  ;;  %v947_v41 = vadd.f32 %v946_v38, %v925_v34  ;;  %1485 = vmatpush.bf16.msra.mxu1 %v3350_v30  ;;  %v3349_v34 = vld [vmem:[#allocation10 + $0x128] sm:$0xff]  ;;  %v3338_v38 = vld [vmem:[#allocation10 + $0xd0] sm:$0xff] }
 0x196   :  { %v1067_v54 = vadd.f32 %v3461_v46, %v1060_v45  ;;  %v885_v58 = vadd.f32 %v884_v20, %v821_v32  ;;  %v3342_v20 = vld [vmem:[#allocation10 + $0xf0] sm:$0xff]  ;;  %v3339_v32 = vld [vmem:[#allocation10 + $0xd8] sm:$0xff] }
 0x197   :  { %1506 = vmatpush.bf16.msra.mxu3 %v3342_v20 }
 0x199   :  { %1486 = vmatpush.bf16.msra.mxu1 %v3349_v34 }
 0x19b   :  { %v1057_v43 = vpop.f32.mrf.mxu3  ;;  %1507 = vmatpush.bf16.msra.mxu3 %v3341_v21 }
 0x19c   :  { %v1061_v48 = vadd.f32 %v1057_v43, %v947_v41  ;;  %v3337_v43 = vld [vmem:[#allocation10 + $0xc8] sm:$0xff] }
 0x19d   :  { %v1031_v49 = vpop.f32.mrf.mxu2  ;;  %1487 = vmatpush.bf16.msra.mxu1 %v3348_v40 }
 0x19e   :  { %v1068_v52 = vadd.f32 %v3461_v46, %v1061_v48  ;;  %v1036_v61 = vadd.f32 %v1031_v49, %v883_v57  ;;  %v3336_v48 = vld [vmem:[#allocation10 + $0xc0] sm:$0xff]  ;;  %v3346_v49 = vld [vmem:[#allocation10 + $0x110] sm:$0xff]  ;;  %v3345_v57 = vld [vmem:[#allocation10 + $0x108] sm:$0xff] }
 0x19f   :  { %1508 = vmatpush.bf16.msra.mxu3 %v3340_v26 }
 0x1a0   :  { %1085 = vmatpush.msrb.mxu0 %v1068_v52  ;;  %v1065_v3 = vadd.f32 %v3461_v46, %v1036_v61 }
 0x1a2   :  { %1086 = vmatpush.msrb.mxu0 %v1067_v54 }
 0x1a3   :  { %1509 = vmatpush.bf16.msra.mxu3 %v3339_v32 }
 0x1a5   :  { %v1033_v59 = vpop.f32.mrf.mxu2 }
 0x1a6   :  { %v1037_v62 = vadd.f32 %v1033_v59, %v885_v58  ;;  %v3358_v58 = vld [vmem:[#allocation10 + $0x170] sm:$0xff] }
 0x1a7   :  { %1510 = vmatpush.bf16.msra.mxu3 %v3338_v38 }
 0x1a8   :  { %v1066_v2 = vadd.f32 %v3461_v46, %v1037_v62  ;;  %v3347_v46 = vld [vmem:[#allocation10 + $0x118] sm:$0xff]  ;;  %v3344_v62 = vld [vmem:[#allocation10 + $0x100] sm:$0xff] }
 0x1a9   :  { %1488 = vmatpush.bf16.msra.mxu1 %v3347_v46 }
 0x1aa   :  { %1087 = vmatpush.msrb.mxu0 %v1066_v2 }
 0x1ab   :  { %1511 = vmatpush.bf16.msra.mxu3 %v3337_v43 }
 0x1ac   :  { %1088 = vmatpush.msrb.mxu0 %v1065_v3 }
 0x1ad   :  { %2992 = vmatmul.msk.f32.vlgmr.msrb.gmra.mxu0 %vm1069_vm4, %v3736_v4  ;;  %1489 = vmatpush.bf16.msra.mxu1 %v3346_v49 }
 0x1ae   :  { %1380 = vmatpush.bf16.msra.mxu0 %v3351_v22  ;;  %v3463_v22 = vld [vmem:[#allocation13] ss:$0 sm:$0xff] }
 0x1af   :  { %1512 = vmatpush.bf16.msra.mxu3 %v3336_v48 }
 0x1b1   :  { %1490 = vmatpush.bf16.msra.mxu1 %v3345_v57 }
 0x1b2   :  { %1381 = vmatpush.bf16.msra.mxu0 %v3350_v30 }
 0x1b5   :  { %1491 = vmatpush.bf16.msra.mxu1 %v3344_v62 }
 0x1b6   :  { %1382 = vmatpush.bf16.msra.mxu0 %v3349_v34 }
 0x1ba   :  { %1383 = vmatpush.bf16.msra.mxu0 %v3348_v40 }
 0x1be   :  { %1384 = vmatpush.bf16.msra.mxu0 %v3347_v46  ;;  %v3353_v46 = vld [vmem:[#allocation10 + $0x148] sm:$0xff] }
 0x1c2   :  { %1385 = vmatpush.bf16.msra.mxu0 %v3346_v49 }
 0x1c6   :  { %1386 = vmatpush.bf16.msra.mxu0 %v3345_v57 }
 0x1ca   :  { %1387 = vmatpush.bf16.msra.mxu0 %v3344_v62 }
 0x22a   :  { %v1090_v6 = vpop.f32.mrf.mxu0 }
 0x22b   :  { %1109 = vmatmul.f32.vlgmr.msrb.gmra.mxu1 %v1090_v6  ;;  %v3356_v6 = vld [vmem:[#allocation10 + $0x160] sm:$0xff] }
 0x2a8   :  { %v1110_v7 = vpop.f32.mrf.mxu1 }
 0x2a9   :  { %v1113_v8 = vperm.slane %v1110_v7, 0 }
 0x2ab   :  { %v3991_v9 = vsub.f32 %v1068_v52, %v1113_v8  ;;  %v3993_v10 = vsub.f32 %v1067_v54, %v1113_v8  ;;  %v3997_v12 = vsub.f32 %v1066_v2, %v1113_v8  ;;  %v4001_v14 = vsub.f32 %v1065_v3, %v1113_v8  ;;  %v3359_v52 = vld [vmem:[#allocation10 + $0x178] sm:$0xff]  ;;  %v3357_v2 = vld [vmem:[#allocation10 + $0x168] sm:$0xff] }
 0x2ac   :  { %1592 = vmatpush.bf16.msrb.mxu0 %v3359_v52 }
 0x2ad   :  { %v1121_v11 = vmul.f32 %v3991_v9, %v3991_v9  ;;  %v1120_v13 = vmul.f32 %v3993_v10, %v3993_v10  ;;  %v1119_v15 = vmul.f32 %v3997_v12, %v3997_v12  ;;  %v1118_v16 = vmul.f32 %v4001_v14, %v4001_v14 }
 0x2af   :  { %1134 = vmatpush.msrb.mxu2 %v1121_v11  ;;  %v3355_v11 = vld [vmem:[#allocation10 + $0x158] sm:$0xff] }
 0x2b0   :  { %1593 = vmatpush.bf16.msrb.mxu0 %v3358_v58 }
 0x2b1   :  { %1135 = vmatpush.msrb.mxu2 %v1120_v13 }
 0x2b3   :  { %1136 = vmatpush.msrb.mxu2 %v1119_v15 }
 0x2b4   :  { %1594 = vmatpush.bf16.msrb.mxu0 %v3357_v2 }
 0x2b5   :  { %1137 = vmatpush.msrb.mxu2 %v1118_v16  ;;  %v3462_v16 = vld [vmem:[#allocation12] ss:$0 sm:$0xff] }
 0x2b6   :  { %2993 = vmatmul.msk.f32.vlgmr.msrb.gmra.mxu2 %vm1069_vm4, %v3736_v4 }
 0x2b7   :  { %1443 = vmatpush.bf16.msra.mxu2 %v3343_v18 }
 0x2b8   :  { %1595 = vmatpush.bf16.msrb.mxu0 %v3356_v6 }
 0x2bb   :  { %1444 = vmatpush.bf16.msra.mxu2 %v3342_v20 }
 0x2bc   :  { %1596 = vmatpush.bf16.msrb.mxu0 %v3355_v11 }
 0x2bf   :  { %1445 = vmatpush.bf16.msra.mxu2 %v3341_v21 }
 0x2c3   :  { %1446 = vmatpush.bf16.msra.mxu2 %v3340_v26  ;;  %v3354_v26 = vld [vmem:[#allocation10 + $0x150] sm:$0xff] }
 0x2c4   :  { %1597 = vmatpush.bf16.msrb.mxu0 %v3354_v26 }
 0x2c7   :  { %1447 = vmatpush.bf16.msra.mxu2 %v3339_v32 }
 0x2c8   :  { %1598 = vmatpush.bf16.msrb.mxu0 %v3353_v46 }
 0x2cb   :  { %1448 = vmatpush.bf16.msra.mxu2 %v3338_v38 }
 0x2cf   :  { %1449 = vmatpush.bf16.msra.mxu2 %v3337_v43 }
 0x2d3   :  { %1450 = vmatpush.bf16.msra.mxu2 %v3336_v48 }
 0x2d7   :  { %1616 = vmatpush.bf16.msrb.mxu2 %v3359_v52 }
 0x2db   :  { %1617 = vmatpush.bf16.msrb.mxu2 %v3358_v58  ;;  %v3352_v58 = vld [vmem:[#allocation10 + $0x140] sm:$0xff] }
 0x2dc   :  { %1599 = vmatpush.bf16.msrb.mxu0 %v3352_v58 }
 0x2df   :  { %1618 = vmatpush.bf16.msrb.mxu2 %v3357_v2 }
 0x2e3   :  { %1619 = vmatpush.bf16.msrb.mxu2 %v3356_v6 }
 0x2e7   :  { %1620 = vmatpush.bf16.msrb.mxu2 %v3355_v11 }
 0x2eb   :  { %1621 = vmatpush.bf16.msrb.mxu2 %v3354_v26 }
 0x2ef   :  { %1622 = vmatpush.bf16.msrb.mxu2 %v3353_v46 }
 0x2f3   :  { %1623 = vmatpush.bf16.msrb.mxu2 %v3352_v58 }
 0x339   :  { %v1139_v17 = vpop.f32.mrf.mxu2 }
 0x33a   :  { %1158 = vmatmul.f32.vlgmr.msrb.gmra.mxu3 %v1139_v17 }
 0x33b   :  { %1659 = vmatpush.msrb.mxu3 %v3922_v23 }
 0x33d   :  { %1660 = vmatpush.msrb.mxu3 %v3924_v24 }
 0x33f   :  { %1661 = vmatpush.msrb.mxu3 %v3928_v27 }
 0x341   :  { %1662 = vmatpush.msrb.mxu3 %v3932_v28 }
 0x343   :  { %1663 = vmatpush.msrb.mxu3 %v3936_v31 }
 0x345   :  { %1664 = vmatpush.msrb.mxu3 %v3940_v33 }
 0x347   :  { %1665 = vmatpush.msrb.mxu3 %v3944_v37 }
 0x349   :  { %1666 = vmatpush.msrb.mxu3 %v3948_v39 }
 0x34b   :  { %1667 = vmatpush.msrb.mxu3 %v3952_v44 }
 0x34d   :  { %1668 = vmatpush.msrb.mxu3 %v3959_v51 }
 0x34f   :  { %1669 = vmatpush.msrb.mxu3 %v3963_v53 }
 0x351   :  { %1670 = vmatpush.msrb.mxu3 %v3966_v55 }
 0x353   :  { %1671 = vmatpush.msrb.mxu3 %v3970_v56 }
 0x355   :  { %1672 = vmatpush.msrb.mxu3 %v3974_v60 }
 0x357   :  { %1673 = vmatpush.msrb.mxu3 %v3978_v1 }
 0x359   :  { %1674 = vmatpush.msrb.mxu3 %v3987_v5 }
 0x3bd   :  { %v1159_v41 = vpop.f32.mrf.mxu3 }
 0x3be   :  { %v1160_v45 = vadd.f32 1e-05, %v1159_v41 }
 0x3c0   :  { %3471 = vrsqrt.f32 %v1160_v45  ;;  %vm1168_vm6 = vweird.f32 %v1160_v45 }
 0x3c6   :  { %v3472_v54 = vpop.eup %3471 }
 0x3c7   :  { %v1163_v59 = vmul.f32 %v3472_v54, %v1160_v45  ;;  %vm1169_vm5 = vweird.f32 %v3472_v54 }
 0x3c8   :  { %vm1170_vm7 = vmor %vm1168_vm6, %vm1169_vm5 }
 0x3c9   :  { %v1164_v61 = vmul.f32 %v3472_v54, %v1163_v59 }
 0x3cb   :  { %v1165_v3 = vmul.f32 0.5, %v1164_v61 }
 0x3cd   :  { %v1166_v7 = vsub.f32 1.5, %v1165_v3 }
 0x3cf   :  { %v1167_v8 = vmul.f32 %v3472_v54, %v1166_v7 }
 0x3d1   :  { %v1171_v13 = vsel %vm1170_vm7, %v3472_v54, %v1167_v8 }
 0x3d2   :  { %v1172_v15 = vperm.slane %v1171_v13, 0 }
 0x3d4   :  { %v1173_v17 = vmul.f32 %v1172_v15, %v4001_v14  ;;  %v1174_v18 = vmul.f32 %v1172_v15, %v3997_v12  ;;  %v1175_v20 = vmul.f32 %v1172_v15, %v3993_v10  ;;  %v1176_v21 = vmul.f32 %v1172_v15, %v3991_v9 }
 0x3d6   :  { %v1181_v30 = vmul.f32 %v3462_v16, %v1173_v17  ;;  %v1182_v32 = vmul.f32 %v3462_v16, %v1174_v18  ;;  %v1183_v34 = vmul.f32 %v3462_v16, %v1175_v20  ;;  %v1184_v38 = vmul.f32 %v3462_v16, %v1176_v21 }
 0x3d8   :  { %v1189_v40 = vadd.f32 %v3463_v22, %v1181_v30  ;;  %v1190_v14 = vadd.f32 %v3463_v22, %v1182_v32  ;;  %v1191_v41 = vadd.f32 %v3463_v22, %v1183_v34  ;;  %v1192_v12 = vadd.f32 %v3463_v22, %v1184_v38  ;;  %v1233_v30 = vld [vmem:[#allocation2] sm:$0xf]  ;;  %v1237_v32 = vld [vmem:[#allocation2 + $0x8] sm:$0x1] }
 0x3da   :  { %v1193_v9 = vmax.f32 %v1189_v40, 0.0  ;;  %v1194_v10 = vmax.f32 %v1190_v14, 0.0  ;;  %v1195_v43 = vmax.f32 %v1191_v41, 0.0  ;;  %v1196_v45 = vmax.f32 %v1192_v12, 0.0 }
 0x3dc   :  { %v4025_v48 = vadd.f32 %v1193_v9, %v3889_v35  ;;  %v4028_v49 = vadd.f32 %v1194_v10, %v3897_v63  ;;  %v4031_v52 = vadd.f32 %v1195_v43, %v3891_v36  ;;  %v4034_v54 = vadd.f32 %v1196_v45, %v3899_v0  ;;  %v1262_v9 = vld [vmem:[#allocation2 + $0x8] sm:$0xe]  ;;  %v1266_v43 = vld [vmem:[#allocation2 + $0x10] sm:$0x3] }
 0x3de   :  { %v1209_v57 = vpack.c.bf16 %v4025_v48, %v4025_v48  ;;  %v1210_v35 = vpack.c.bf16 %v4028_v49, %v4028_v49  ;;  %v1211_v63 = vpack.c.bf16 %v4031_v52, %v4031_v52  ;;  %v1212_v36 = vpack.c.bf16 %v4034_v54, %v4034_v54 }
 0x3e0   :  { %v1214_v0 = vshrl.u32 %v1209_v57, 16  ;;  %v1222_v59 = vshrl.u32 %v1210_v35, 16  ;;  %v1241_v61 = vshrl.u32 %v1211_v63, 16  ;;  %v1244_v62 = vshll.u32 %v1211_v63, 16 }
 0x3e1   :  { %v1250_v2 = vshrl.u32 %v1212_v36, 16  ;;  %v1253_v3 = vshll.u32 %v1212_v36, 16  ;;  %v1217_v7 = vshll.u32 %v1209_v57, 16  ;;  %v1225_v11 = vshll.u32 %v1210_v35, 16 }
 0x3e2   :  { %v1216_v6 = vrot.slane %v1214_v0, 7  ;;  %v1224_v8 = vrot.slane %v1222_v59, 7  ;;  %v1243_v13 = vrot.slane %v1241_v61, 6  ;;  %v1246_v15 = vrot.slane %v1244_v62, 7 }
 0x3e3   :  { %v1252_v16 = vrot.slane %v1250_v2, 6  ;;  %v1255_v17 = vrot.slane %v1253_v3, 7 }
 0x3e4   :  { %v1219_v18 = vor.u32 %v1217_v7, %v1216_v6  ;;  %v1220_v20 = vrot.slane %v1216_v6, 4  ;;  %v1227_v21 = vor.u32 %v1225_v11, %v1224_v8  ;;  %v1229_v22 = vrot.slane %v1224_v8, 4 }
 0x3e5   :  { %v1247_v34 = vor.u32 %v1246_v15, %v1243_v13  ;;  %v1256_v26 = vor.u32 %v1255_v17, %v1252_v16 }
 0x3e6   :  { %v1228_v38 = vsel %vm3834_vm9, %v1220_v20, %v1227_v21  ;;  %v1234_v40 = vsel %vm3840_vm11, %v1219_v18, %v1233_v30  ;;  %v1238_v14 = vsel %vm3846_vm12, %v1229_v22, %v1237_v32 }
 0x3e7   :  { %v1248_v41 = vrot.slane %v1247_v34, 4  ;;  %v1258_v12 = vrot.slane %v1256_v26, 4  ;;  %1235 = vst [vmem:[#allocation2] sm:$0xf] %v1234_v40  ;;  %v1263_v10 = vsel %vm3852_vm13, %v1247_v34, %v1262_v9 }
 0x3e8   :  { %1236 = vst [vmem:[#allocation2 + $0x4] sm:$0xf] %v1228_v38 }
 0x3e9   :  { %v1257_v45 = vsel %vm3864_vm14, %v1248_v41, %v1256_v26  ;;  %v1267_v46 = vsel %vm3870_vm15, %v1258_v12, %v1266_v43  ;;  %1239 = vst [vmem:[#allocation2 + $0x8] sm:$0x1] %v1238_v14 }
 0x3ea   :  { %1265 = vst [vmem:[#allocation2 + $0xc] sm:$0xf] %v1257_v45 }
 0x3eb   :  { %1264 = vst [vmem:[#allocation2 + $0x8] sm:$0xe] %v1263_v10 }
 0x3ec   :  { %1268 = vst [vmem:[#allocation2 + $0x10] sm:$0x3] %v1267_v46 }
 0x3ef   :  { %v3417_v57 = vld [vmem:[#allocation2] sm:$0xff]  }
 0x3f0   :  { %1451 = vmatmul.bf16.vlgmr.msra.gmra.mxu2 %v3417_v57  ;;  %v1310_v35 = vld [vmem:[#allocation2 + $0x8] sm:$0x1]  ;;  %v1322_v63 = vshll.u32 %v3417_v57, 16  ;;  %v1320_v11 = vshrl.u32 %v3417_v57, 16 }
 0x3f1   :  { %v1316_v36 = vunpack.c.l.b16 %v1310_v35  ;;  %v1291_v0 = vld [vmem:[#allocation2 + $0xc] sm:$0xf] }
 0x3f2   :  { %v1324_v59 = vrot.slane %v1322_v63, 1  ;;  %v1290_v61 = vld [vmem:[#allocation2 + $0x8] sm:$0xe]  ;;  %v1462_v62 = vunpack.c.l.b16 %v1291_v0 }
 0x3f3   :  { %v1608_v2 = vld [vmem:[#allocation2 + $0x8] sm:$0xc]  ;;  %v1318_v3 = vpack.c.b16 %v1316_v36, %v1316_v36  ;;  %v1292_v6 = vld [vmem:[#allocation2 + $0x10] sm:$0x1]  ;;  %v1461_v7 = vunpack.c.l.b16 %v1290_v61  ;;  %v3435_v61 = vld [vmem:[#allocation2] sm:$0xe] }
 0x3f4   :  { %v1457_v8 = vld [vmem:[#allocation2 + $0x10] sm:$0x3]  ;;  %v1499_v13 = vunpack.c.l.b16 %v1292_v6  ;;  %v1610_v15 = vunpack.c.l.b16 %v1608_v2  ;;  %v1325_v18 = vor.u32 %v1324_v59, %v1320_v11  ;;  %v3434_v59 = vld [vmem:[#allocation2] sm:$0xf0] }
 0x3f5   :  { %v1463_v58 = vunpack.c.l.b16 %v1457_v8  ;;  %v1327_v16 = vshll.u32 %v1318_v3, 16  ;;  %v1464_v17 = vpack.c.b16 %v1462_v62, %v1461_v7  ;;  %v1541_v2 = vrot.slane %v1318_v3, 1 }
 0x3f6   :  { %v1500_v20 = vpack.c.b16 %v1499_v13, %v1499_v13  ;;  %v1611_v22 = vpack.c.b16 %v1462_v62, %v1610_v15  ;;  %v3436_v62 = vor.u32 %v3435_v61, %v3434_v59 }
 0x3f7   :  { %v1465_v21 = vpack.c.b16 %v1463_v58, %v1463_v58  ;;  %v1329_v30 = vrot.slane %v1327_v16, 1  ;;  %v1501_v32 = vrot.slane %v1464_v17, 1  ;;  %v1467_v34 = vshrl.u32 %v1464_v17, 16 }
 0x3f8   :  { %v1470_v26 = vshll.u32 %v1464_v17, 16  ;;  %v1502_v38 = vrot.slane %v1500_v20, 1  ;;  %v1612_v57 = vrot.slane %v1611_v22, 2  ;;  %v1540_v6 = vrot.slane %v3436_v62, 1 }
 0x3f9   :  { %v1475_v40 = vshrl.u32 %v1465_v21, 16  ;;  %v1478_v14 = vshll.u32 %v1465_v21, 16  ;;  %v1330_v41 = vsel %vm293_vm0, %v1325_v18, %v1329_v30  ;;  %v1469_v12 = vrot.slane %v1467_v34, 1  ;;  %v3464_v34 = vld [vmem:[%s4223_s4 + $0x1] ss:$0 sm:$0xff] }
 0x3fa   :  { %v1472_v9 = vrot.slane %v1470_v26, 2  ;;  %1388 = vmatmul.bf16.vlgmr.msra.gmra.mxu0 %v1330_v41  ;;  %v1503_v10 = vsel %vm477_vm1, %v1501_v32, %v1502_v38  ;;  %v1613_v35 = vrot.slane %v1465_v21, 2  ;;  %v1542_v7 = vsel %vm477_vm1, %v1540_v6, %v1541_v2 }
 0x3fb   :  { %v1477_v43 = vrot.slane %v1475_v40, 1  ;;  %v1480_v45 = vrot.slane %v1478_v14, 2  ;;  %1513 = vmatmul.bf16.vlgmr.msra.gmra.mxu3 %v1503_v10  ;;  %1708 = vmatpush.msra.mxu0 %v3922_v23 }
 0x3fc   :  { %v1473_v46 = vor.u32 %v1472_v9, %v1469_v12  ;;  %v1614_v0 = vsel %vm589_vm3, %v1612_v57, %v1613_v35 }
 0x3fd   :  { %v1481_v63 = vor.u32 %v1480_v45, %v1477_v43  ;;  %1709 = vmatpush.msra.mxu0 %v3924_v24 }
 0x3ff   :  { %v1482_v36 = vsel %vm441_vm2, %v1473_v46, %v1481_v63  ;;  %1710 = vmatpush.msra.mxu0 %v3928_v27 }
 0x400   :  { %1492 = vmatmul.bf16.vlgmr.msra.gmra.mxu1 %v1482_v36  ;;  %1624 = vmatmul.bf16.vlgmr.msrb.gmra.mxu2 %v1614_v0 }
 0x401   :  { %1711 = vmatpush.msra.mxu0 %v3932_v28 }
 0x403   :  { %1712 = vmatpush.msra.mxu0 %v3936_v31 }
 0x405   :  { %1713 = vmatpush.msra.mxu0 %v3940_v33 }
 0x407   :  { %1714 = vmatpush.msra.mxu0 %v3944_v37 }
 0x409   :  { %1715 = vmatpush.msra.mxu0 %v3948_v39 }
 0x40a   :  { %1600 = vmatmul.bf16.vlgmr.msrb.gmra.mxu0 %v1542_v7 }
 0x40b   :  { %1716 = vmatpush.msra.mxu0 %v3952_v44 }
 0x40d   :  { %1717 = vmatpush.msra.mxu0 %v3959_v51 }
 0x40f   :  { %1718 = vmatpush.msra.mxu0 %v3963_v53 }
 0x411   :  { %1719 = vmatpush.msra.mxu0 %v3966_v55 }
 0x413   :  { %1720 = vmatpush.msra.mxu0 %v3970_v56 }
 0x415   :  { %1721 = vmatpush.msra.mxu0 %v3974_v60 }
 0x417   :  { %1722 = vmatpush.msra.mxu0 %v3978_v1 }
 0x419   :  { %1723 = vmatpush.msra.mxu0 %v3987_v5 }
 0x473   :  { %v1452_v3 = vpop.f32.mrf.mxu2 }
 0x477   :  { %v1389_v8 = vpop.f32.mrf.mxu0 }
 0x478   :  { %v1453_v38 = vadd.f32 %v1452_v3, %v1389_v8  ;;  %v3367_v3 = vld [vmem:[#allocation10 + $0x1b8] sm:$0xff]  ;;  %v3366_v8 = vld [vmem:[#allocation10 + $0x1b0] sm:$0xff] }
 0x479   :  { %2073 = vmatpush.bf16.msrb.mxu0 %v3367_v3 }
 0x47b   :  { %v1454_v11 = vpop.f32.mrf.mxu2 }
 0x47d   :  { %v1493_v58 = vpop.f32.mrf.mxu1  ;;  %2074 = vmatpush.bf16.msrb.mxu0 %v3366_v8 }
 0x47e   :  { %v1514_v13 = vpop.f32.mrf.mxu3 }
 0x47f   :  { %v1391_v15 = vpop.f32.mrf.mxu0  ;;  %v1515_v21 = vadd.f32 %v1514_v13, %v1493_v58  ;;  %v3375_v13 = vld [vmem:[#allocation10 + $0x1f8] sm:$0xff]  ;;  %v3364_v58 = vld [vmem:[#allocation10 + $0x1a0] sm:$0xff] }
 0x480   :  { %v1455_v40 = vadd.f32 %v1454_v11, %v1391_v15  ;;  %v3365_v11 = vld [vmem:[#allocation10 + $0x1a8] sm:$0xff]  ;;  %1948 = vmatpush.bf16.msra.mxu2 %v3375_v13  ;;  %2052 = vmatpush.bf16.msra.mxu3 %v3375_v13  ;;  %v3374_v15 = vld [vmem:[#allocation10 + $0x1f0] sm:$0xff] }
 0x481   :  { %2075 = vmatpush.bf16.msrb.mxu0 %v3365_v11 }
 0x483   :  { %v1625_v16 = vpop.f32.mrf.mxu2 }
 0x484   :  { %v1630_v32 = vadd.f32 %v1625_v16, %v1515_v21  ;;  %1949 = vmatpush.bf16.msra.mxu2 %v3374_v15  ;;  %2053 = vmatpush.bf16.msra.mxu3 %v3374_v15  ;;  %v3363_v16 = vld [vmem:[#allocation10 + $0x198] sm:$0xff] }
 0x485   :  { %v1495_v20 = vpop.f32.mrf.mxu1  ;;  %2076 = vmatpush.bf16.msrb.mxu0 %v3364_v58 }
 0x486   :  { %v1516_v17 = vpop.f32.mrf.mxu3  ;;  %v1637_v12 = vadd.f32 %v3464_v34, %v1630_v32  ;;  %v3371_v32 = vld [vmem:[#allocation10 + $0x1d8] sm:$0xff] }
 0x487   :  { %v1601_v18 = vpop.f32.mrf.mxu0  ;;  %v1517_v22 = vadd.f32 %v1516_v17, %v1495_v20  ;;  %v3373_v17 = vld [vmem:[#allocation10 + $0x1e8] sm:$0xff]  ;;  %v3372_v20 = vld [vmem:[#allocation10 + $0x1e0] sm:$0xff] }
 0x488   :  { %v1606_v9 = vadd.f32 %v1601_v18, %v1453_v38  ;;  %1950 = vmatpush.bf16.msra.mxu2 %v3373_v17  ;;  %2054 = vmatpush.bf16.msra.mxu3 %v3373_v17  ;;  %v3362_v18 = vld [vmem:[#allocation10 + $0x190] sm:$0xff]  ;;  %v3383_v38 = vld [vmem:[#allocation10 + $0x238] sm:$0xff] }
 0x489   :  { %2077 = vmatpush.bf16.msrb.mxu0 %v3363_v16 }
 0x48a   :  { %v1635_v45 = vadd.f32 %v3464_v34, %v1606_v9 }
 0x48b   :  { %v1627_v30 = vpop.f32.mrf.mxu2 }
 0x48c   :  { %v1631_v26 = vadd.f32 %v1627_v30, %v1517_v22  ;;  %1951 = vmatpush.bf16.msra.mxu2 %v3372_v20  ;;  %2055 = vmatpush.bf16.msra.mxu3 %v3372_v20  ;;  %v3361_v22 = vld [vmem:[#allocation10 + $0x188] sm:$0xff] }
 0x48d   :  { %2078 = vmatpush.bf16.msrb.mxu0 %v3362_v18 }
 0x48e   :  { %v1638_v14 = vadd.f32 %v3464_v34, %v1631_v26  ;;  %v3370_v26 = vld [vmem:[#allocation10 + $0x1d0] sm:$0xff] }
 0x48f   :  { %v1603_v41 = vpop.f32.mrf.mxu0 }
 0x490   :  { %v1607_v10 = vadd.f32 %v1603_v41, %v1455_v40  ;;  %1651 = vmatpush.msrb.mxu1 %v1638_v14  ;;  %1952 = vmatpush.bf16.msra.mxu2 %v3371_v32  ;;  %v3382_v41 = vld [vmem:[#allocation10 + $0x230] sm:$0xff] }
 0x491   :  { %2079 = vmatpush.bf16.msrb.mxu0 %v3361_v22  ;;  %2056 = vmatpush.bf16.msra.mxu3 %v3371_v32 }
 0x492   :  { %v1636_v43 = vadd.f32 %v3464_v34, %v1607_v10  ;;  %1652 = vmatpush.msrb.mxu1 %v1637_v12  ;;  %v3360_v34 = vld [vmem:[#allocation10 + $0x180] sm:$0xff] }
 0x493   :  { %v3368_v10 = vld [vmem:[#allocation10 + $0x1c0] sm:$0xff] }
 0x494   :  { %1653 = vmatpush.msrb.mxu1 %v1636_v43  ;;  %1953 = vmatpush.bf16.msra.mxu2 %v3370_v26 }
 0x495   :  { %2080 = vmatpush.bf16.msrb.mxu0 %v3360_v34  ;;  %2057 = vmatpush.bf16.msra.mxu3 %v3370_v26 }
 0x496   :  { %1654 = vmatpush.msrb.mxu1 %v1635_v45 }
 0x497   :  { %3091 = vmatmul.msk.f32.vlgmr.msrb.gmra.mxu1 %vm1069_vm4, %v3736_v4 }
 0x514   :  { %v1656_v46 = vpop.f32.mrf.mxu1 }
 0x515   :  { %1675 = vmatmul.f32.vlgmr.msrb.gmra.mxu3 %v1656_v46 }
 0x598   :  { %v1676_v57 = vpop.f32.mrf.mxu3 }
 0x599   :  { %v1679_v35 = vperm.slane %v1676_v57, 0  ;;  %v3379_v57 = vld [vmem:[#allocation10 + $0x218] sm:$0xff] }
 0x59b   :  { %v4087_v63 = vsub.f32 %v1638_v14, %v1679_v35  ;;  %v4089_v36 = vsub.f32 %v1637_v12, %v1679_v35  ;;  %v4093_v59 = vsub.f32 %v1636_v43, %v1679_v35  ;;  %v4097_v62 = vsub.f32 %v1635_v45, %v1679_v35  ;;  %v3369_v14 = vld [vmem:[#allocation10 + $0x1c8] sm:$0xff] }
 0x59c   :  { %1954 = vmatpush.bf16.msra.mxu2 %v3369_v14  ;;  %2058 = vmatpush.bf16.msra.mxu3 %v3369_v14  ;;  %v3381_v43 = vld [vmem:[#allocation10 + $0x228] sm:$0xff] }
 0x59d   :  { %v1687_v0 = vmul.f32 %v4087_v63, %v4087_v63  ;;  %v1686_v61 = vmul.f32 %v4089_v36, %v4089_v36  ;;  %v1685_v2 = vmul.f32 %v4093_v59, %v4093_v59  ;;  %v1684_v6 = vmul.f32 %v4097_v62, %v4097_v62 }
 0x59f   :  { %1700 = vmatpush.msra.mxu1 %v1687_v0 }
 0x5a0   :  { %1955 = vmatpush.bf16.msra.mxu2 %v3368_v10  ;;  %2059 = vmatpush.bf16.msra.mxu3 %v3368_v10 }
 0x5a1   :  { %1701 = vmatpush.msra.mxu1 %v1686_v61 }
 0x5a3   :  { %1702 = vmatpush.msra.mxu1 %v1685_v2 }
 0x5a4   :  { %2160 = vmatpush.bf16.msrb.mxu2 %v3383_v38 }
 0x5a5   :  { %1703 = vmatpush.msra.mxu1 %v1684_v6  ;;  %v3466_v6 = vld [vmem:[#allocation13 + $0x1] ss:$0 sm:$0xff] }
 0x5a6   :  { %3092 = vmatmul.msk.f32.vlgmr.msra.gmra.mxu1 %vm1069_vm4, %v3736_v4 }
 0x5a7   :  { %2011 = vmatpush.bf16.msrb.mxu1 %v3367_v3 }
 0x5a8   :  { %2161 = vmatpush.bf16.msrb.mxu2 %v3382_v41 }
 0x5ab   :  { %2012 = vmatpush.bf16.msrb.mxu1 %v3366_v8 }
 0x5ac   :  { %2162 = vmatpush.bf16.msrb.mxu2 %v3381_v43 }
 0x5af   :  { %2013 = vmatpush.bf16.msrb.mxu1 %v3365_v11 }
 0x5b3   :  { %2014 = vmatpush.bf16.msrb.mxu1 %v3364_v58 }
 0x5b7   :  { %2015 = vmatpush.bf16.msrb.mxu1 %v3363_v16  ;;  %v3377_v16 = vld [vmem:[#allocation10 + $0x208] sm:$0xff] }
 0x5bb   :  { %2016 = vmatpush.bf16.msrb.mxu1 %v3362_v18 }
 0x5bf   :  { %2017 = vmatpush.bf16.msrb.mxu1 %v3361_v22 }
 0x5c3   :  { %2018 = vmatpush.bf16.msrb.mxu1 %v3360_v34 }
 0x5c7   :  { %2184 = vmatpush.bf16.msra.mxu1 %v3383_v38 }
 0x5cb   :  { %2185 = vmatpush.bf16.msra.mxu1 %v3382_v41 }
 0x5cf   :  { %2186 = vmatpush.bf16.msra.mxu1 %v3381_v43 }
 0x623   :  { %v1705_v7 = vpop.f32.mrf.mxu1 }
 0x624   :  { %1724 = vmatmul.f32.vlgmr.msra.gmra.mxu0 %v1705_v7  ;;  %v3378_v7 = vld [vmem:[#allocation10 + $0x210] sm:$0xff] }
 0x625   :  { %2227 = vmatpush.msra.mxu0 %v3922_v23  ;;  %v3380_v23 = vld [vmem:[#allocation10 + $0x220] sm:$0xff] }
 0x626   :  { %2187 = vmatpush.bf16.msra.mxu1 %v3380_v23  ;;  %2163 = vmatpush.bf16.msrb.mxu2 %v3380_v23  ;;  %v1805_v23 = vld [vmem:[#allocation2 + $0x8] sm:$0x1] }
 0x627   :  { %2228 = vmatpush.msra.mxu0 %v3924_v24 }
 0x629   :  { %2229 = vmatpush.msra.mxu0 %v3928_v27 }
 0x62a   :  { %2188 = vmatpush.bf16.msra.mxu1 %v3379_v57  ;;  %2164 = vmatpush.bf16.msrb.mxu2 %v3379_v57 }
 0x62b   :  { %2230 = vmatpush.msra.mxu0 %v3932_v28  ;;  %v3465_v28 = vld [vmem:[#allocation12 + $0x1] ss:$0 sm:$0xff] }
 0x62d   :  { %2231 = vmatpush.msra.mxu0 %v3936_v31 }
 0x62e   :  { %2189 = vmatpush.bf16.msra.mxu1 %v3378_v7  ;;  %2165 = vmatpush.bf16.msrb.mxu2 %v3378_v7 }
 0x62f   :  { %2232 = vmatpush.msra.mxu0 %v3940_v33 }
 0x631   :  { %2233 = vmatpush.msra.mxu0 %v3944_v37 }
 0x632   :  { %2190 = vmatpush.bf16.msra.mxu1 %v3377_v16  ;;  %2166 = vmatpush.bf16.msrb.mxu2 %v3377_v16 }
 0x633   :  { %2234 = vmatpush.msra.mxu0 %v3948_v39 }
 0x635   :  { %2235 = vmatpush.msra.mxu0 %v3952_v44 }
 0x637   :  { %2236 = vmatpush.msra.mxu0 %v3959_v51 }
 0x639   :  { %2237 = vmatpush.msra.mxu0 %v3963_v53 }
 0x63b   :  { %2238 = vmatpush.msra.mxu0 %v3966_v55 }
 0x63d   :  { %2239 = vmatpush.msra.mxu0 %v3970_v56 }
 0x63f   :  { %2240 = vmatpush.msra.mxu0 %v3974_v60 }
 0x641   :  { %2241 = vmatpush.msra.mxu0 %v3978_v1 }
 0x643   :  { %2242 = vmatpush.msra.mxu0 %v3987_v5 }
 0x6a1   :  { %v1725_v21 = vpop.f32.mrf.mxu0 }
 0x6a2   :  { %v1726_v30 = vadd.f32 1e-05, %v1725_v21 }
 0x6a4   :  { %3473 = vrsqrt.f32 %v1726_v30  ;;  %vm1734_vm10 = vweird.f32 %v1726_v30 }
 0x6aa   :  { %v3474_v40 = vpop.eup %3473 }
 0x6ab   :  { %v1729_v12 = vmul.f32 %v3474_v40, %v1726_v30  ;;  %vm1735_vm8 = vweird.f32 %v3474_v40 }
 0x6ac   :  { %vm1736_vm5 = vmor %vm1734_vm10, %vm1735_vm8 }
 0x6ad   :  { %v1730_v9 = vmul.f32 %v3474_v40, %v1729_v12 }
 0x6af   :  { %v1731_v45 = vmul.f32 0.5, %v1730_v9 }
 0x6b1   :  { %v1732_v46 = vsub.f32 1.5, %v1731_v45  ;;  %v1801_v45 = vld [vmem:[#allocation2] sm:$0xf] }
 0x6b3   :  { %v1733_v24 = vmul.f32 %v3474_v40, %v1732_v46 }
 0x6b5   :  { %v1737_v27 = vsel %vm1736_vm5, %v3474_v40, %v1733_v24 }
 0x6b6   :  { %v1738_v35 = vperm.slane %v1737_v27, 0 }
 0x6b8   :  { %v1739_v0 = vmul.f32 %v1738_v35, %v4097_v62  ;;  %v1740_v61 = vmul.f32 %v1738_v35, %v4093_v59  ;;  %v1741_v2 = vmul.f32 %v1738_v35, %v4089_v36  ;;  %v1742_v31 = vmul.f32 %v1738_v35, %v4087_v63 }
 0x6ba   :  { %v1748_v33 = vmul.f32 %v3465_v28, %v1739_v0  ;;  %v1749_v3 = vmul.f32 %v3465_v28, %v1740_v61  ;;  %v1750_v8 = vmul.f32 %v3465_v28, %v1741_v2  ;;  %v1751_v11 = vmul.f32 %v3465_v28, %v1742_v31  ;;  %v1830_v28 = vld [vmem:[#allocation2 + $0x8] sm:$0xe]  ;;  %v1834_v61 = vld [vmem:[#allocation2 + $0x10] sm:$0x3] }
 0x6bc   :  { %v1757_v37 = vadd.f32 %v3466_v6, %v1748_v33  ;;  %v1758_v62 = vadd.f32 %v3466_v6, %v1749_v3  ;;  %v1759_v13 = vadd.f32 %v3466_v6, %v1750_v8  ;;  %v1760_v59 = vadd.f32 %v3466_v6, %v1751_v11 }
 0x6be   :  { %v1761_v63 = vmax.f32 %v1757_v37, 0.0  ;;  %v1762_v36 = vmax.f32 %v1758_v62, 0.0  ;;  %v1763_v58 = vmax.f32 %v1759_v13, 0.0  ;;  %v1764_v15 = vmax.f32 %v1760_v59, 0.0 }
 0x6c0   :  { %v4121_v39 = vadd.f32 %v1761_v63, %v4025_v48  ;;  %v4124_v44 = vadd.f32 %v1762_v36, %v4028_v49  ;;  %v4127_v17 = vadd.f32 %v1763_v58, %v4031_v52  ;;  %v4130_v18 = vadd.f32 %v1764_v15, %v4034_v54  ;;  %v3376_v52 = vld [vmem:[#allocation10 + $0x200] sm:$0xff] }
 0x6c1   :  { %2191 = vmatpush.bf16.msra.mxu1 %v3376_v52  ;;  %2167 = vmatpush.bf16.msrb.mxu2 %v3376_v52 }
 0x6c2   :  { %v1777_v51 = vpack.c.bf16 %v4121_v39, %v4121_v39  ;;  %v1778_v53 = vpack.c.bf16 %v4124_v44, %v4124_v44  ;;  %v1779_v48 = vpack.c.bf16 %v4127_v17, %v4127_v17  ;;  %v1780_v49 = vpack.c.bf16 %v4130_v18, %v4130_v18 }
 0x6c4   :  { %v1782_v54 = vshrl.u32 %v1777_v51, 16  ;;  %v1790_v20 = vshrl.u32 %v1778_v53, 16  ;;  %v1809_v21 = vshrl.u32 %v1779_v48, 16  ;;  %v1812_v55 = vshll.u32 %v1779_v48, 16 }
 0x6c5   :  { %v1818_v22 = vshrl.u32 %v1780_v49, 16  ;;  %v1821_v30 = vshll.u32 %v1780_v49, 16  ;;  %v1785_v34 = vshll.u32 %v1777_v51, 16  ;;  %v1793_v38 = vshll.u32 %v1778_v53, 16 }
 0x6c6   :  { %v1784_v32 = vrot.slane %v1782_v54, 7  ;;  %v1792_v26 = vrot.slane %v1790_v20, 7  ;;  %v1811_v40 = vrot.slane %v1809_v21, 6  ;;  %v1814_v14 = vrot.slane %v1812_v55, 7 }
 0x6c7   :  { %v1820_v41 = vrot.slane %v1818_v22, 6  ;;  %v1823_v12 = vrot.slane %v1821_v30, 7 }
 0x6c8   :  { %v1787_v56 = vor.u32 %v1785_v34, %v1784_v32  ;;  %v1788_v9 = vrot.slane %v1784_v32, 4  ;;  %v1795_v10 = vor.u32 %v1793_v38, %v1792_v26  ;;  %v1797_v43 = vrot.slane %v1792_v26, 4 }
 0x6c9   :  { %v1815_v46 = vor.u32 %v1814_v14, %v1811_v40  ;;  %v1824_v24 = vor.u32 %v1823_v12, %v1820_v41 }
 0x6ca   :  { %v1796_v60 = vsel %vm3834_vm9, %v1788_v9, %v1795_v10  ;;  %v1802_v57 = vsel %vm3840_vm11, %v1787_v56, %v1801_v45  ;;  %v1806_v1 = vsel %vm3846_vm12, %v1797_v43, %v1805_v23  ;;  %v3477_v45 = vld [vmem:[#allocation16 + $0x78] sm:$0xff] }
 0x6cb   :  { %v1816_v27 = vrot.slane %v1815_v46, 4  ;;  %v1826_v35 = vrot.slane %v1824_v24, 4  ;;  %1803 = vst [vmem:[#allocation2] sm:$0xf] %v1802_v57  ;;  %v1831_v0 = vsel %vm3852_vm13, %v1815_v46, %v1830_v28  ;;  %v3478_v46 = vld [vmem:[#allocation16 + $0x70] sm:$0xff]  ;;  %v3479_v57 = vld [vmem:[#allocation16 + $0x68] sm:$0xff] }
 0x6cc   :  { %1804 = vst [vmem:[#allocation2 + $0x4] sm:$0xf] %v1796_v60 }
 0x6cd   :  { %v1825_v5 = vsel %vm3864_vm14, %v1816_v27, %v1824_v24  ;;  %v1835_v2 = vsel %vm3870_vm15, %v1826_v35, %v1834_v61  ;;  %1807 = vst [vmem:[#allocation2 + $0x8] sm:$0x1] %v1806_v1  ;;  %v3480_v35 = vld [vmem:[#allocation16 + $0x60] sm:$0xff] }
 0x6ce   :  { %1833 = vst [vmem:[#allocation2 + $0xc] sm:$0xf] %v1825_v5  ;;  %v3482_v5 = vld [vmem:[#allocation16 + $0x50] sm:$0xff] }
 0x6cf   :  { %1832 = vst [vmem:[#allocation2 + $0x8] sm:$0xe] %v1831_v0  ;;  %v3481_v0 = vld [vmem:[#allocation16 + $0x58] sm:$0xff] }
 0x6d0   :  { %1836 = vst [vmem:[#allocation2 + $0x10] sm:$0x3] %v1835_v2 }
 0x6d2   :  { %v3438_v27 = vld [vmem:[#allocation2] sm:$0xe] }
 0x6d3   :  { %v3421_v31 = vld [vmem:[#allocation2] sm:$0xff]  }
 0x6d4   :  { %2019 = vmatmul.bf16.vlgmr.msrb.gmra.mxu1 %v3421_v31  ;;  %v1878_v6 = vld [vmem:[#allocation2 + $0x8] sm:$0x1]  ;;  %v1890_v7 = vshll.u32 %v3421_v31, 16  ;;  %v1888_v58 = vshrl.u32 %v3421_v31, 16  ;;  %v3437_v1 = vld [vmem:[#allocation2] sm:$0xf0] }
 0x6d5   :  { %v1884_v33 = vunpack.c.l.b16 %v1878_v6  ;;  %v1859_v3 = vld [vmem:[#allocation2 + $0xc] sm:$0xf]  ;;  %v3439_v28 = vor.u32 %v3438_v27, %v3437_v1 }
 0x6d6   :  { %v1892_v8 = vrot.slane %v1890_v7, 1  ;;  %v1858_v11 = vld [vmem:[#allocation2 + $0x8] sm:$0xe]  ;;  %v2030_v37 = vunpack.c.l.b16 %v1859_v3  ;;  %v3484_v7 = vld [vmem:[#allocation16 + $0x40] sm:$0xff]  ;;  %v3486_v3 = vld [vmem:[#allocation16 + $0x30] sm:$0xff] }
 0x6d7   :  { %v2176_v62 = vld [vmem:[#allocation2 + $0x8] sm:$0xc]  ;;  %v1886_v13 = vpack.c.b16 %v1884_v33, %v1884_v33  ;;  %v1860_v59 = vld [vmem:[#allocation2 + $0x10] sm:$0x1]  ;;  %v2029_v63 = vunpack.c.l.b16 %v1858_v11  ;;  %v2108_v2 = vrot.slane %v3439_v28, 1  ;;  %v3485_v33 = vld [vmem:[#allocation16 + $0x38] sm:$0xff] }
 0x6d8   :  { %v2025_v36 = vld [vmem:[#allocation2 + $0x10] sm:$0x3]  ;;  %v2067_v15 = vunpack.c.l.b16 %v1860_v59  ;;  %v2178_v51 = vunpack.c.l.b16 %v2176_v62  ;;  %v1893_v49 = vor.u32 %v1892_v8, %v1888_v58  ;;  %v3483_v31 = vld [vmem:[#allocation16 + $0x48] sm:$0xff]  ;;  %v3488_v11 = vld [vmem:[#allocation16 + $0x20] sm:$0xff] }
 0x6d9   :  { %v2031_v16 = vunpack.c.l.b16 %v2025_v36  ;;  %v1895_v53 = vshll.u32 %v1886_v13, 16  ;;  %v2032_v48 = vpack.c.b16 %v2030_v37, %v2029_v63  ;;  %v2109_v61 = vrot.slane %v1886_v13, 1  ;;  %v3487_v8 = vld [vmem:[#allocation16 + $0x28] sm:$0xff]  ;;  %v3490_v62 = vld [vmem:[#allocation16 + $0x10] sm:$0xff]  ;;  %v3492_v59 = vld [vmem:[#allocation16] sm:$0xff] }
 0x6da   :  { %v2068_v52 = vpack.c.b16 %v2067_v15, %v2067_v15  ;;  %v2179_v20 = vpack.c.b16 %v2030_v37, %v2178_v51  ;;  %v3489_v37 = vld [vmem:[#allocation16 + $0x18] sm:$0xff]  ;;  %v3491_v13 = vld [vmem:[#allocation16 + $0x8] sm:$0xff] }
 0x6db   :  { %v2033_v54 = vpack.c.b16 %v2031_v16, %v2031_v16  ;;  %v1897_v21 = vrot.slane %v1895_v53, 1  ;;  %v2069_v55 = vrot.slane %v2032_v48, 1  ;;  %v2035_v22 = vshrl.u32 %v2032_v48, 16  ;;  %v3391_v28 = vld [vmem:[#allocation15 + $0x38] sm:$0xff] }
 0x6dc   :  { %v2038_v30 = vshll.u32 %v2032_v48, 16  ;;  %v2070_v32 = vrot.slane %v2068_v52, 1  ;;  %v2180_v10 = vrot.slane %v2179_v20, 2  ;;  %v2110_v6 = vsel %vm477_vm1, %v2108_v2, %v2109_v61  ;;  %v3389_v61 = vld [vmem:[#allocation15 + $0x28] sm:$0xff]  ;;  %v3388_v2 = vld [vmem:[#allocation15 + $0x20] sm:$0xff] }
 0x6dd   :  { %v2043_v34 = vshrl.u32 %v2033_v54, 16  ;;  %v2046_v26 = vshll.u32 %v2033_v54, 16  ;;  %v1898_v38 = vsel %vm293_vm0, %v1893_v49, %v1897_v21  ;;  %v2037_v40 = vrot.slane %v2035_v22, 1  ;;  %v3467_v22 = vld [vmem:[%s4223_s4 + $0x2] ss:$0 sm:$0xff] }
 0x6de   :  { %v2040_v14 = vrot.slane %v2038_v30, 2  ;;  %1956 = vmatmul.bf16.vlgmr.msra.gmra.mxu2 %v1898_v38  ;;  %v2071_v41 = vsel %vm477_vm1, %v2069_v55, %v2070_v32  ;;  %v2181_v43 = vrot.slane %v2033_v54, 2 }
 0x6df   :  { %v2045_v12 = vrot.slane %v2043_v34, 1  ;;  %v2048_v56 = vrot.slane %v2046_v26, 2  ;;  %2081 = vmatmul.bf16.vlgmr.msrb.gmra.mxu0 %v2071_v41  ;;  %2276 = vmatpush.msra.mxu2 %v3477_v45 }
 0x6e0   :  { %v2041_v9 = vor.u32 %v2040_v14, %v2037_v40  ;;  %v2182_v60 = vsel %vm589_vm3, %v2180_v10, %v2181_v43 }
 0x6e1   :  { %v2049_v23 = vor.u32 %v2048_v56, %v2045_v12  ;;  %2277 = vmatpush.msra.mxu2 %v3478_v46 }
 0x6e3   :  { %v2050_v24 = vsel %vm441_vm2, %v2041_v9, %v2049_v23  ;;  %2278 = vmatpush.msra.mxu2 %v3479_v57 }
 0x6e4   :  { %2060 = vmatmul.bf16.vlgmr.msra.gmra.mxu3 %v2050_v24  ;;  %2192 = vmatmul.bf16.vlgmr.msra.gmra.mxu1 %v2182_v60 }
 0x6e5   :  { %2279 = vmatpush.msra.mxu2 %v3480_v35 }
 0x6e7   :  { %2280 = vmatpush.msra.mxu2 %v3481_v0  ;;  %v3390_v0 = vld [vmem:[#allocation15 + $0x30] sm:$0xff] }
 0x6e9   :  { %2281 = vmatpush.msra.mxu2 %v3482_v5  ;;  %v3399_v5 = vld [vmem:[#allocation15 + $0x78] sm:$0xff] }
 0x6ea   :  { %2514 = vmatpush.bf16.msrb.mxu1 %v3399_v5  ;;  %2618 = vmatpush.bf16.msrb.mxu0 %v3399_v5 }
 0x6eb   :  { %2282 = vmatpush.msra.mxu2 %v3483_v31  ;;  %v3398_v31 = vld [vmem:[#allocation15 + $0x70] sm:$0xff] }
 0x6ed   :  { %2283 = vmatpush.msra.mxu2 %v3484_v7  ;;  %v3386_v7 = vld [vmem:[#allocation15 + $0x10] sm:$0xff] }
 0x6ee   :  { %2168 = vmatmul.bf16.vlgmr.msrb.gmra.mxu2 %v2110_v6  ;;  %2515 = vmatpush.bf16.msrb.mxu1 %v3398_v31  ;;  %v3397_v6 = vld [vmem:[#allocation15 + $0x68] sm:$0xff] }
 0x6ef   :  { %2284 = vmatpush.msra.mxu2 %v3485_v33  ;;  %2619 = vmatpush.bf16.msrb.mxu0 %v3398_v31  ;;  %v3396_v33 = vld [vmem:[#allocation15 + $0x60] sm:$0xff] }
 0x6f0   :  { %v3400_v31 = vld [vmem:[#allocation15 + $0x80] sm:$0xff] }
 0x6f1   :  { %2285 = vmatpush.msra.mxu2 %v3486_v3 }
 0x6f2   :  { %2516 = vmatpush.bf16.msrb.mxu1 %v3397_v6 }
 0x6f3   :  { %2286 = vmatpush.msra.mxu2 %v3487_v8  ;;  %2620 = vmatpush.bf16.msrb.mxu0 %v3397_v6  ;;  %v3385_v8 = vld [vmem:[#allocation15 + $0x8] sm:$0xff] }
 0x6f5   :  { %2287 = vmatpush.msra.mxu2 %v3488_v11 }
 0x6f6   :  { %2517 = vmatpush.bf16.msrb.mxu1 %v3396_v33 }
 0x6f7   :  { %2288 = vmatpush.msra.mxu2 %v3489_v37  ;;  %2621 = vmatpush.bf16.msrb.mxu0 %v3396_v33  ;;  %v3395_v37 = vld [vmem:[#allocation15 + $0x58] sm:$0xff] }
 0x6f9   :  { %2289 = vmatpush.msra.mxu2 %v3490_v62  ;;  %v3384_v62 = vld [vmem:[#allocation15] sm:$0xff] }
 0x6fa   :  { %2518 = vmatpush.bf16.msrb.mxu1 %v3395_v37 }
 0x6fb   :  { %2290 = vmatpush.msra.mxu2 %v3491_v13  ;;  %2622 = vmatpush.bf16.msrb.mxu0 %v3395_v37  ;;  %v3394_v13 = vld [vmem:[#allocation15 + $0x50] sm:$0xff] }
 0x6fd   :  { %2291 = vmatpush.msra.mxu2 %v3492_v59  ;;  %v3407_v59 = vld [vmem:[#allocation15 + $0xb8] sm:$0xff] }
 0x6fe   :  { %2519 = vmatpush.bf16.msrb.mxu1 %v3394_v13 }
 0x6ff   :  { %2639 = vmatpush.bf16.msrb.mxu2 %v3391_v28  ;;  %2623 = vmatpush.bf16.msrb.mxu0 %v3394_v13 }
 0x703   :  { %2640 = vmatpush.bf16.msrb.mxu2 %v3390_v0 }
 0x707   :  { %2641 = vmatpush.bf16.msrb.mxu2 %v3389_v61 }
 0x70b   :  { %2642 = vmatpush.bf16.msrb.mxu2 %v3388_v2 }
 0x751   :  { %v2020_v63 = vpop.f32.mrf.mxu1 }
 0x759   :  { %v2022_v36 = vpop.f32.mrf.mxu1 }
 0x75c   :  { %v2082_v15 = vpop.f32.mrf.mxu0 }
 0x761   :  { %v1957_v58 = vpop.f32.mrf.mxu2  ;;  %v2193_v16 = vpop.f32.mrf.mxu1 }
 0x762   :  { %v2021_v26 = vadd.f32 %v2020_v63, %v1957_v58  ;;  %v3406_v58 = vld [vmem:[#allocation15 + $0xb0] sm:$0xff] }
 0x764   :  { %v2084_v49 = vpop.f32.mrf.mxu0 }
 0x767   :  { %v2061_v51 = vpop.f32.mrf.mxu3 }
 0x768   :  { %v2083_v48 = vadd.f32 %v2082_v15, %v2061_v51  ;;  %v3392_v51 = vld [vmem:[#allocation15 + $0x40] sm:$0xff] }
 0x769   :  { %v1959_v53 = vpop.f32.mrf.mxu2  ;;  %v2195_v20 = vpop.f32.mrf.mxu1 }
 0x76a   :  { %v2198_v21 = vadd.f32 %v2193_v16, %v2083_v48  ;;  %v2023_v38 = vadd.f32 %v2022_v36, %v1959_v53  ;;  %v3393_v36 = vld [vmem:[#allocation15 + $0x48] sm:$0xff] }
 0x76b   :  { %2520 = vmatpush.bf16.msrb.mxu1 %v3393_v36  ;;  %2624 = vmatpush.bf16.msrb.mxu0 %v3393_v36  ;;  %v3405_v53 = vld [vmem:[#allocation15 + $0xa8] sm:$0xff] }
 0x76c   :  { %v2205_v34 = vadd.f32 %v3467_v22, %v2198_v21 }
 0x76f   :  { %v2063_v52 = vpop.f32.mrf.mxu3  ;;  %2521 = vmatpush.bf16.msrb.mxu1 %v3392_v51  ;;  %2625 = vmatpush.bf16.msrb.mxu0 %v3392_v51 }
 0x770   :  { %v2085_v54 = vadd.f32 %v2084_v49, %v2063_v52  ;;  %v3404_v49 = vld [vmem:[#allocation15 + $0xa0] sm:$0xff] }
 0x771   :  { %v2169_v30 = vpop.f32.mrf.mxu2 }
 0x772   :  { %v2199_v55 = vadd.f32 %v2195_v20, %v2085_v54  ;;  %v2174_v14 = vadd.f32 %v2169_v30, %v2021_v26 }
 0x773   :  { %2726 = vmatpush.bf16.msra.mxu1 %v3407_v59 }
 0x774   :  { %v2206_v32 = vadd.f32 %v3467_v22, %v2199_v55  ;;  %v2203_v56 = vadd.f32 %v3467_v22, %v2174_v14  ;;  %v3468_v55 = vld [vmem:[#allocation12 + $0x2] ss:$0 sm:$0xff] }
 0x776   :  { %2219 = vmatpush.msrb.mxu3 %v2206_v32 }
 0x777   :  { %2727 = vmatpush.bf16.msra.mxu1 %v3406_v58 }
 0x778   :  { %2220 = vmatpush.msrb.mxu3 %v2205_v34 }
 0x779   :  { %v2171_v40 = vpop.f32.mrf.mxu2 }
 0x77a   :  { %v2175_v41 = vadd.f32 %v2171_v40, %v2023_v38  ;;  %v3469_v38 = vld [vmem:[#allocation13 + $0x2] ss:$0 sm:$0xff]  ;;  %v3402_v40 = vld [vmem:[#allocation15 + $0x90] sm:$0xff] }
 0x77b   :  { %2728 = vmatpush.bf16.msra.mxu1 %v3405_v53 }
 0x77c   :  { %v2204_v12 = vadd.f32 %v3467_v22, %v2175_v41  ;;  %v3403_v22 = vld [vmem:[#allocation15 + $0x98] sm:$0xff] }
 0x77e   :  { %2221 = vmatpush.msrb.mxu3 %v2204_v12 }
 0x77f   :  { %2729 = vmatpush.bf16.msra.mxu1 %v3404_v49 }
 0x780   :  { %2222 = vmatpush.msrb.mxu3 %v2203_v56 }
 0x781   :  { %3190 = vmatmul.msk.f32.vlgmr.msrb.gmra.mxu3 %vm1069_vm4, %v3736_v4 }
 0x783   :  { %2730 = vmatpush.bf16.msra.mxu1 %v3403_v22 }
 0x787   :  { %2731 = vmatpush.bf16.msra.mxu1 %v3402_v40 }
 0x804   :  { %v2224_v9 = vpop.f32.mrf.mxu3 }
 0x805   :  { %2243 = vmatmul.f32.vlgmr.msra.gmra.mxu0 %v2224_v9 }
 0x882   :  { %v2244_v10 = vpop.f32.mrf.mxu0 }
 0x883   :  { %v2247_v43 = vperm.slane %v2244_v10, 0 }
 0x885   :  { %v4167_v45 = vsub.f32 %v2206_v32, %v2247_v43  ;;  %v4169_v23 = vsub.f32 %v2205_v34, %v2247_v43  ;;  %v4173_v24 = vsub.f32 %v2204_v12, %v2247_v43  ;;  %v4177_v57 = vsub.f32 %v2203_v56, %v2247_v43 }
 0x887   :  { %v2255_v46 = vmul.f32 %v4167_v45, %v4167_v45  ;;  %v2254_v60 = vmul.f32 %v4169_v23, %v4169_v23  ;;  %v2253_v1 = vmul.f32 %v4173_v24, %v4173_v24  ;;  %v2252_v27 = vmul.f32 %v4177_v57, %v4177_v57 }
 0x889   :  { %2268 = vmatpush.msra.mxu3 %v2255_v46 }
 0x88b   :  { %2269 = vmatpush.msra.mxu3 %v2254_v60 }
 0x88d   :  { %2270 = vmatpush.msra.mxu3 %v2253_v1  ;;  %v3401_v1 = vld [vmem:[#allocation15 + $0x88] sm:$0xff] }
 0x88e   :  { %2732 = vmatpush.bf16.msra.mxu1 %v3401_v1 }
 0x88f   :  { %2271 = vmatpush.msra.mxu3 %v2252_v27 }
 0x890   :  { %3191 = vmatmul.msk.f32.vlgmr.msra.gmra.mxu3 %vm1069_vm4, %v3736_v4  ;;  %v3387_v4 = vld [vmem:[#allocation15 + $0x18] sm:$0xff] }
 0x891   :  { %2577 = vmatpush.bf16.msrb.mxu3 %v3391_v28  ;;  %2643 = vmatpush.bf16.msrb.mxu2 %v3387_v4 }
 0x892   :  { %2733 = vmatpush.bf16.msra.mxu1 %v3400_v31 }
 0x895   :  { %2578 = vmatpush.bf16.msrb.mxu3 %v3390_v0  ;;  %2644 = vmatpush.bf16.msrb.mxu2 %v3386_v7 }
 0x899   :  { %2579 = vmatpush.bf16.msrb.mxu3 %v3389_v61  ;;  %2645 = vmatpush.bf16.msrb.mxu2 %v3385_v8 }
 0x89d   :  { %2580 = vmatpush.bf16.msrb.mxu3 %v3388_v2  ;;  %2646 = vmatpush.bf16.msrb.mxu2 %v3384_v62 }
 0x8a1   :  { %2581 = vmatpush.bf16.msrb.mxu3 %v3387_v4 }
 0x8a5   :  { %2582 = vmatpush.bf16.msrb.mxu3 %v3386_v7 }
 0x8a9   :  { %2583 = vmatpush.bf16.msrb.mxu3 %v3385_v8 }
 0x8ad   :  { %2584 = vmatpush.bf16.msrb.mxu3 %v3384_v62 }
 0x8b1   :  { %2750 = vmatpush.bf16.msra.mxu3 %v3407_v59 }
 0x8b5   :  { %2751 = vmatpush.bf16.msra.mxu3 %v3406_v58 }
 0x8b9   :  { %2752 = vmatpush.bf16.msra.mxu3 %v3405_v53 }
 0x8bd   :  { %2753 = vmatpush.bf16.msra.mxu3 %v3404_v49 }
 0x8c1   :  { %2754 = vmatpush.bf16.msra.mxu3 %v3403_v22  ;;  %v2402_v22 = vld [vmem:[#allocation2 + $0x10] sm:$0x3] }
 0x8c5   :  { %2755 = vmatpush.bf16.msra.mxu3 %v3402_v40 }
 0x8c9   :  { %2756 = vmatpush.bf16.msra.mxu3 %v3401_v1 }
 0x8cd   :  { %2757 = vmatpush.bf16.msra.mxu3 %v3400_v31 }
 0x913   :  { %v2273_v35 = vpop.f32.mrf.mxu3 }
 0x914   :  { %2292 = vmatmul.f32.vlgmr.msra.gmra.mxu2 %v2273_v35 }
 0x997   :  { %v2293_v3 = vpop.f32.mrf.mxu2 }
 0x998   :  { %v2294_v11 = vadd.f32 1e-05, %v2293_v3 }
 0x99a   :  { %3475 = vrsqrt.f32 %v2294_v11  ;;  %vm2302_vm6 = vweird.f32 %v2294_v11 }
 0x9a0   :  { %v3476_v63 = vpop.eup %3475 }
 0x9a1   :  { %v2297_v15 = vmul.f32 %v3476_v63, %v2294_v11  ;;  %vm2303_vm4 = vweird.f32 %v3476_v63 }
 0x9a2   :  { %vm2304_vm7 = vmor %vm2302_vm6, %vm2303_vm4 }
 0x9a3   :  { %v2298_v16 = vmul.f32 %v3476_v63, %v2297_v15  ;;  %v2369_v15 = vld [vmem:[#allocation2] sm:$0xf] }
 0x9a5   :  { %v2299_v48 = vmul.f32 0.5, %v2298_v16  ;;  %v2373_v16 = vld [vmem:[#allocation2 + $0x8] sm:$0x1] }
 0x9a7   :  { %v2300_v52 = vsub.f32 1.5, %v2299_v48 }
 0x9a9   :  { %v2301_v54 = vmul.f32 %v3476_v63, %v2300_v52 }
 0x9ab   :  { %v2305_v20 = vsel %vm2304_vm7, %v3476_v63, %v2301_v54 }
 0x9ac   :  { %v2306_v21 = vperm.slane %v2305_v20, 0 }
 0x9ae   :  { %v2307_v30 = vmul.f32 %v2306_v21, %v4177_v57  ;;  %v2308_v32 = vmul.f32 %v2306_v21, %v4173_v24  ;;  %v2309_v34 = vmul.f32 %v2306_v21, %v4169_v23  ;;  %v2310_v26 = vmul.f32 %v2306_v21, %v4167_v45  ;;  %v2398_v21 = vld [vmem:[#allocation2 + $0x8] sm:$0xe] }
 0x9b0   :  { %v2316_v14 = vmul.f32 %v3468_v55, %v2307_v30  ;;  %v2317_v41 = vmul.f32 %v3468_v55, %v2308_v32  ;;  %v2318_v12 = vmul.f32 %v3468_v55, %v2309_v34  ;;  %v2319_v56 = vmul.f32 %v3468_v55, %v2310_v26 }
 0x9b2   :  { %v2325_v9 = vadd.f32 %v3469_v38, %v2316_v14  ;;  %v2326_v10 = vadd.f32 %v3469_v38, %v2317_v41  ;;  %v2327_v43 = vadd.f32 %v3469_v38, %v2318_v12  ;;  %v2328_v46 = vadd.f32 %v3469_v38, %v2319_v56 }
 0x9b4   :  { %v2329_v60 = vmax.f32 %v2325_v9, 0.0  ;;  %v2330_v24 = vmax.f32 %v2326_v10, 0.0  ;;  %v2331_v57 = vmax.f32 %v2327_v43, 0.0  ;;  %v2332_v23 = vmax.f32 %v2328_v46, 0.0 }
 0x9b6   :  { %v2333_v45 = vadd.f32 %v2329_v60, %v4121_v39  ;;  %v2334_v27 = vadd.f32 %v2330_v24, %v4124_v44  ;;  %v2335_v35 = vadd.f32 %v2331_v57, %v4127_v17  ;;  %v2336_v28 = vadd.f32 %v2332_v23, %v4130_v18 }
 0x9b8   :  { %v2345_v0 = vpack.c.bf16 %v2333_v45, %v2333_v45  ;;  %v2346_v61 = vpack.c.bf16 %v2334_v27, %v2334_v27  ;;  %v2347_v5 = vpack.c.bf16 %v2335_v35, %v2335_v35  ;;  %v2348_v2 = vpack.c.bf16 %v2336_v28, %v2336_v28 }
 0x9ba   :  { %v2350_v4 = vshrl.u32 %v2345_v0, 16  ;;  %v2358_v6 = vshrl.u32 %v2346_v61, 16  ;;  %v2377_v7 = vshrl.u32 %v2347_v5, 16  ;;  %v2380_v33 = vshll.u32 %v2347_v5, 16 }
 0x9bb   :  { %v2386_v3 = vshrl.u32 %v2348_v2, 16  ;;  %v2389_v39 = vshll.u32 %v2348_v2, 16  ;;  %v2353_v8 = vshll.u32 %v2345_v0, 16  ;;  %v2361_v11 = vshll.u32 %v2346_v61, 16 }
 0x9bc   :  { %v2352_v44 = vrot.slane %v2350_v4, 7  ;;  %v2360_v17 = vrot.slane %v2358_v6, 7  ;;  %v2379_v18 = vrot.slane %v2377_v7, 6  ;;  %v2382_v37 = vrot.slane %v2380_v33, 7 }
 0x9bd   :  { %v2388_v62 = vrot.slane %v2386_v3, 6  ;;  %v2391_v13 = vrot.slane %v2389_v39, 7 }
 0x9be   :  { %v2355_v59 = vor.u32 %v2353_v8, %v2352_v44  ;;  %v2356_v63 = vrot.slane %v2352_v44, 4  ;;  %v2363_v36 = vor.u32 %v2361_v11, %v2360_v17  ;;  %v2365_v58 = vrot.slane %v2360_v17, 4 }
 0x9bf   :  { %v2383_v51 = vor.u32 %v2382_v37, %v2379_v18  ;;  %v2392_v53 = vor.u32 %v2391_v13, %v2388_v62 }
 0x9c0   :  { %v2364_v48 = vsel %vm3834_vm9, %v2356_v63, %v2363_v36  ;;  %v2370_v49 = vsel %vm3840_vm11, %v2355_v59, %v2369_v15  ;;  %v2374_v52 = vsel %vm3846_vm12, %v2365_v58, %v2373_v16 }
 0x9c1   :  { %v2384_v54 = vrot.slane %v2383_v51, 4  ;;  %v2394_v20 = vrot.slane %v2392_v53, 4  ;;  %2371 = vst [vmem:[#allocation2] sm:$0xf] %v2370_v49  ;;  %v2399_v55 = vsel %vm3852_vm13, %v2383_v51, %v2398_v21  ;;  %v3470_v49 = vld [vmem:[%s4227_s8] ss:$0 sm:$0xff] }
 0x9c2   :  { %2372 = vst [vmem:[#allocation2 + $0x4] sm:$0xf] %v2364_v48 }
 0x9c3   :  { %v2393_v30 = vsel %vm3864_vm14, %v2384_v54, %v2392_v53  ;;  %v2403_v19 = vsel %vm3870_vm15, %v2394_v20, %v2402_v22  ;;  %2375 = vst [vmem:[#allocation2 + $0x8] sm:$0x1] %v2374_v52 }
 0x9c4   :  { %2401 = vst [vmem:[#allocation2 + $0xc] sm:$0xf] %v2393_v30 }
 0x9c5   :  { %2400 = vst [vmem:[#allocation2 + $0x8] sm:$0xe] %v2399_v55 }
 0x9c6   :  { %2404 = vst [vmem:[#allocation2 + $0x10] sm:$0x3] %v2403_v19 }
 0x9c8   :  { %v3441_v37 = vld [vmem:[#allocation2] sm:$0xe] }
 0x9c9   :  { %v3425_v25 = vld [vmem:[#allocation2] sm:$0xff]  }
 0x9ca   :  { %v2456_v29 = vshll.u32 %v3425_v25, 16  ;;  %2585 = vmatmul.bf16.vlgmr.msrb.gmra.mxu3 %v3425_v25  ;;  %v2444_v32 = vld [vmem:[#allocation2 + $0x8] sm:$0x1]  ;;  %v2454_v56 = vshrl.u32 %v3425_v25, 16  ;;  %v3440_v18 = vld [vmem:[#allocation2] sm:$0xf0] }
 0x9cb   :  { %v2450_v34 = vunpack.c.l.b16 %v2444_v32  ;;  %v2425_v42 = vld [vmem:[#allocation2 + $0xc] sm:$0xf]  ;;  %v3442_v62 = vor.u32 %v3441_v37, %v3440_v18 }
 0x9cc   :  { %v2458_v26 = vrot.slane %v2456_v29, 1  ;;  %v2424_v38 = vld [vmem:[#allocation2 + $0x8] sm:$0xe]  ;;  %v2596_v40 = vunpack.c.l.b16 %v2425_v42 }
 0x9cd   :  { %v2742_v14 = vld [vmem:[#allocation2 + $0x8] sm:$0xc]  ;;  %v2452_v47 = vpack.c.b16 %v2450_v34, %v2450_v34  ;;  %v2426_v41 = vld [vmem:[#allocation2 + $0x10] sm:$0x1]  ;;  %v2595_v12 = vunpack.c.l.b16 %v2424_v38  ;;  %v2674_v59 = vrot.slane %v3442_v62, 1 }
 0x9ce   :  { %v2591_v50 = vld [vmem:[#allocation2 + $0x10] sm:$0x3]  ;;  %v2633_v9 = vunpack.c.l.b16 %v2426_v41  ;;  %v2744_v43 = vunpack.c.l.b16 %v2742_v14  ;;  %v2459_v24 = vor.u32 %v2458_v26, %v2454_v56 }
 0x9cf   :  { %v2597_v10 = vunpack.c.l.b16 %v2591_v50  ;;  %v2461_v46 = vshll.u32 %v2452_v47, 16  ;;  %v2598_v60 = vpack.c.b16 %v2596_v40, %v2595_v12  ;;  %v2675_v13 = vrot.slane %v2452_v47, 1 }
 0x9d0   :  { %v2634_v57 = vpack.c.b16 %v2633_v9, %v2633_v9  ;;  %v2745_v1 = vpack.c.b16 %v2596_v40, %v2744_v43 }
 0x9d1   :  { %v2599_v23 = vpack.c.b16 %v2597_v10, %v2597_v10  ;;  %v2463_v45 = vrot.slane %v2461_v46, 1  ;;  %v2635_v27 = vrot.slane %v2598_v60, 1  ;;  %v2601_v35 = vshrl.u32 %v2598_v60, 16 }
 0x9d2   :  { %v2604_v28 = vshll.u32 %v2598_v60, 16  ;;  %v2636_v0 = vrot.slane %v2634_v57, 1  ;;  %v2746_v39 = vrot.slane %v2745_v1, 2  ;;  %v2676_v63 = vsel %vm477_vm1, %v2674_v59, %v2675_v13 }
 0x9d3   :  { %v2609_v61 = vshrl.u32 %v2599_v23, 16  ;;  %v2612_v5 = vshll.u32 %v2599_v23, 16  ;;  %v2464_v2 = vsel %vm293_vm0, %v2459_v24, %v2463_v45  ;;  %v2603_v31 = vrot.slane %v2601_v35, 1 }
 0x9d4   :  { %v2606_v4 = vrot.slane %v2604_v28, 2  ;;  %2522 = vmatmul.bf16.vlgmr.msrb.gmra.mxu1 %v2464_v2  ;;  %v2637_v6 = vsel %vm477_vm1, %v2635_v27, %v2636_v0  ;;  %v2747_v44 = vrot.slane %v2599_v23, 2 }
 0x9d5   :  { %v2611_v7 = vrot.slane %v2609_v61, 1  ;;  %v2614_v33 = vrot.slane %v2612_v5, 2  ;;  %2647 = vmatmul.bf16.vlgmr.msrb.gmra.mxu2 %v2637_v6 }
 0x9d6   :  { %v2607_v3 = vor.u32 %v2606_v4, %v2603_v31  ;;  %v2748_v11 = vsel %vm589_vm3, %v2746_v39, %v2747_v44 }
 0x9d7   :  { %v2615_v8 = vor.u32 %v2614_v33, %v2611_v7 }
 0x9d9   :  { %v2616_v17 = vsel %vm441_vm2, %v2607_v3, %v2615_v8 }
 0x9da   :  { %2626 = vmatmul.bf16.vlgmr.msrb.gmra.mxu0 %v2616_v17  ;;  %2758 = vmatmul.bf16.vlgmr.msra.gmra.mxu3 %v2748_v11 }
 0x9e4   :  { %2734 = vmatmul.bf16.vlgmr.msra.gmra.mxu1 %v2676_v63 }
 0xa4d   :  { %v2586_v36 = vpop.f32.mrf.mxu3 }
 0xa51   :  { %v2523_v58 = vpop.f32.mrf.mxu1 }
 0xa52   :  { %v2587_v20 = vadd.f32 %v2586_v36, %v2523_v58 }
 0xa55   :  { %v2588_v15 = vpop.f32.mrf.mxu3 }
 0xa57   :  { %v2627_v51 = vpop.f32.mrf.mxu0 }
 0xa58   :  { %v2648_v16 = vpop.f32.mrf.mxu2 }
 0xa59   :  { %v2525_v53 = vpop.f32.mrf.mxu1  ;;  %v2649_v48 = vadd.f32 %v2648_v16, %v2627_v51 }
 0xa5a   :  { %v2589_v42 = vadd.f32 %v2588_v15, %v2525_v53 }
 0xa5d   :  { %v2759_v52 = vpop.f32.mrf.mxu3 }
 0xa5e   :  { %v2764_v54 = vadd.f32 %v2759_v52, %v2649_v48 }
 0xa5f   :  { %v2629_v19 = vpop.f32.mrf.mxu0 }
 0xa60   :  { %v2771_v21 = vadd.f32 %v3470_v49, %v2764_v54  ;;  %v2650_v55 = vpop.f32.mrf.mxu2 }
 0xa61   :  { %v2735_v22 = vpop.f32.mrf.mxu1  ;;  %v2651_v25 = vadd.f32 %v2650_v55, %v2629_v19 }
 0xa62   :  { %2775 = vst [vmem:[#allocation18 + $0x10] sm:$0xff] %v2771_v21  ;;  %v2740_v30 = vadd.f32 %v2735_v22, %v2587_v20 }
 0xa64   :  { %v2769_v29 = vadd.f32 %v3470_v49, %v2740_v30 }
 0xa65   :  { %v2761_v32 = vpop.f32.mrf.mxu3 }
 0xa66   :  { %2773 = vst [vmem:[#allocation18] sm:$0xff] %v2769_v29  ;;  %v2765_v34 = vadd.f32 %v2761_v32, %v2651_v25 }
 0xa68   :  { %v2772_v26 = vadd.f32 %v3470_v49, %v2765_v34 }
 0xa69   :  { %v2737_v38 = vpop.f32.mrf.mxu1 }
 0xa6a   :  { %2776 = vst [vmem:[#allocation18 + $0x18] sm:$0xff] %v2772_v26  ;;  %v2741_v40 = vadd.f32 %v2737_v38, %v2589_v42 }
 0xa6c   :  { %v2770_v14 = vadd.f32 %v3470_v49, %v2741_v40 }
 0xa6e   :  { %2774 = vst [vmem:[#allocation18 + $0x8] sm:$0xff] %v2770_v14 }
 0xa6f   :  { %2789 = dma.vmem_to_hbm [thread:$0]  %s2782_s18, 512, %s2784_s0, [#allocation6], %s3729_s15, %s3729_s15, %s3730_s16  }
 0xa70   :  { %3719 = dma.done.wait [#allocation6], 512  }
 0xa71   :  { %3720 = vsyncadd [#allocation6], 4294966784 }
 0xa72   :  { %2794 = vsyncpa [#allocation5], 1 }
 0xa73   :  { %2795 = vsyncpa [#allocation8], 1 }
 0xa74   :  { %2796 = vsyncpa [#allocation11], 1 }
 0xa75   :  { %2797 = vsyncpa [#allocation14], 1 }
 0xa76   :  { %2798 = vsyncpa [#allocation17], 1 }
 0xa77   :  { %2799 = vsyncpa [#allocation6], 1 }

</bundles_post_ra>
